<compile_context>
chip_gen: v5e
topology: v5e:2x2
jax: 0.10.0
libtpu: 0.0.40
codegen_flags: <defaults>
</compile_context>

<pallas_src>
import functools

import jax
import jax.numpy as jnp
from jax import lax
from jax.experimental import pallas as pl
from jax.experimental.pallas import tpu as pltpu


# ---------------------------------------------------------------------------
# Kernel
# ---------------------------------------------------------------------------
def _mha_kernel(q_ref, k_ref, v_ref,
                wq_ref, wk_ref, wv_ref, wm_ref,
                bq_ref, bk_ref, bv_ref, bm_ref,
                o_ref,
                qp_ref, kp_ref, vp_ref,
                *, num_heads, dk, seq_len, batch_tile, compute_dtype):
    S = seq_len
    D = q_ref.shape[-1]
    cdt = compute_dtype
    is_f32 = jnp.dtype(cdt) == jnp.dtype(jnp.float32)
    scale = 1.0 / float(dk) ** 0.5
    unroll_heads = num_heads <= 8

    # MXU-native operands; accumulation stays f32 via preferred_element_type.
    qf = q_ref[...].astype(cdt)                      # (tb*S, D)
    kf = k_ref[...].astype(cdt)
    vf = v_ref[...].astype(cdt)

    # ---- head-major projections into VMEM scratch: (H, tb, S, dk) ----------
    # Weights arrive pre-split per head (wq_ref[h] == Wq^T[:, h*dk:(h+1)*dk]),
    # so no lane-axis slicing at non-128-multiple offsets happens in-kernel.
    def project(h, carry):
        qp = jnp.dot(qf, wq_ref[h], preferred_element_type=jnp.float32) + bq_ref[h]
        kp = jnp.dot(kf, wk_ref[h], preferred_element_type=jnp.float32) + bk_ref[h]
        vp = jnp.dot(vf, wv_ref[h], preferred_element_type=jnp.float32) + bv_ref[h]
        qp_ref[h] = qp.reshape(batch_tile, S, dk).astype(cdt)
        kp_ref[h] = kp.reshape(batch_tile, S, dk).astype(cdt)
        vp_ref[h] = vp.reshape(batch_tile, S, dk).astype(cdt)
        return carry

    lax.fori_loop(0, num_heads, project, 0, unroll=unroll_heads)

    bm = bm_ref[...]                                  # (1, D) f32

    # ---- attention + folded merge (ref-backed loops bound live ranges) -----
    def batch_body(b, carry):
        def head_body(h, acc):
            qh = qp_ref[h, b]                         # (S, dk) compute dtype
            kh = kp_ref[h, b]
            vh = vp_ref[h, b]
            # scores = qh @ kh^T / sqrt(dk): contract last dims -> MXU trans_b
            s = lax.dot_general(qh, kh, (((1,), (1,)), ((), ())),
                                preferred_element_type=jnp.float32) * scale
            # softmax over keys, in f32
            s = s - jnp.max(s, axis=-1, keepdims=True)
            e = jnp.exp(s)
            denom = jnp.sum(e, axis=-1, keepdims=True)
            if is_f32:
                att = e / denom                        # precise path
            else:
                # EUP reciprocal: keeps the divide off the VALU (~free slot)
                att = e * pl.reciprocal(denom, approx=True)
            # TODO(synk): nn.Dropout(p=0.2) on att is identity in eval mode; skipped.
            oh = jnp.dot(att.astype(cdt), vh, preferred_element_type=jnp.float32)
            # Fold linear_merge: concat_h(oh) @ Wm^T == sum_h oh @ Wm^T[h]
            return acc + jnp.dot(oh.astype(cdt), wm_ref[h],
                                 preferred_element_type=jnp.float32)

        acc0 = jnp.zeros((S, D), jnp.float32)
        out_b = lax.fori_loop(0, num_heads, head_body, acc0,
                              unroll=unroll_heads) + bm
        r0 = pl.multiple_of(b * S, S)
        o_ref[pl.ds(r0, S), :] = out_b.astype(o_ref.dtype)   # lane-dense store
        return carry

    lax.fori_loop(0, batch_tile, batch_body, 0)


# ---------------------------------------------------------------------------
# Wrapper
# ---------------------------------------------------------------------------
def _round_up(x, m):
    return -(-x // m) * m


def _vmem_capacity_bytes():
    try:
        return int(pltpu.get_tpu_info().vmem_capacity_bytes)
    except Exception:
        return 64 * 1024 * 1024        # conservative (v7x per-core VMEM)


def _is_dual_tensorcore_chip():
    try:
        kind = jax.devices()[0].device_kind.lower()
    except Exception:
        return False
    return ("v7" in kind) or ("7x" in kind)


def _pick_batch_tile(B, S, D, H, dk, in_bytes, out_bytes, c_bytes, vmem_cap):
    """Largest batch tile whose working set fits a per-generation VMEM budget."""
    lane = 128
    dk_p = _round_up(dk, lane)
    d_p = _round_up(D, lane)
    budget = int(vmem_cap * 0.55)                              # compiler headroom
    # Grid-invariant operands (single-buffered):
    fixed = (3 * H * D * dk_p + H * dk_p * d_p) * c_bytes      # Wq/Wk/Wv, Wm
    fixed += (3 * H * dk_p + d_p) * 4                          # biases (f32)
    # Per batch row of the tile:
    per_b = S * d_p * (3 * 2 * in_bytes + 2 * out_bytes)       # q/k/v + out (2-deep)
    per_b += 3 * H * S * dk_p * c_bytes                        # qp/kp/vp scratch
    tb = (budget - fixed) // max(per_b, 1)
    return int(max(1, min(B, tb)))


def _build_call(Bp, tb, S, D, H, dk, out_dtype, compute_dtype,
                single_buffer_weights, vmem_limit_bytes):
    kernel = functools.partial(
        _mha_kernel, num_heads=H, dk=dk, seq_len=S, batch_tile=tb,
        compute_dtype=compute_dtype)

    def invariant_spec(shape):
        # Grid-invariant operand: constant index_map; single-buffer it so it
        # does not get pointlessly double-buffered (saves VMEM for a bigger tb).
        if single_buffer_weights:
            return pl.BlockSpec(shape, lambda i, s=shape: (0,) * len(s),
                                pipeline_mode=pl.Buffered(1))
        return pl.BlockSpec(shape, lambda i, s=shape: (0,) * len(s))

    row_spec = pl.BlockSpec((tb * S, D), lambda i: (i, 0))

    return pl.pallas_call(
        kernel,
        out_shape=jax.ShapeDtypeStruct((Bp * S, D), out_dtype),
        grid_spec=pltpu.PrefetchScalarGridSpec(
            num_scalar_prefetch=0,
            grid=(Bp // tb,),
            in_specs=[
                row_spec, row_spec, row_spec,        # q, k, v  (2-D, lane-dense)
                invariant_spec((H, D, dk)),          # Wq^T head-major
                invariant_spec((H, D, dk)),          # Wk^T head-major
                invariant_spec((H, D, dk)),          # Wv^T head-major
                invariant_spec((H, dk, D)),          # Wm^T head-major rows
                invariant_spec((H, 1, dk)),          # bq
                invariant_spec((H, 1, dk)),          # bk
                invariant_spec((H, 1, dk)),          # bv
                invariant_spec((1, D)),              # bm
            ],
            out_specs=pl.BlockSpec((tb * S, D), lambda i: (i, 0)),
            scratch_shapes=[pltpu.VMEM((H, tb, S, dk), compute_dtype)
                            for _ in range(3)],
        ),
        compiler_params=pltpu.CompilerParams(
            dimension_semantics=("parallel",),
            vmem_limit_bytes=vmem_limit_bytes),
    )


def sparse_mhatt(q, k, v, wq, bq, wk, bk, wv, bv, wm, bm, *, num_heads,
                 compute_dtype=jnp.bfloat16, max_batch_tile=None):
    """Sparse_MHAtt forward (eval mode).

    q,k,v: [B,S,D]; w*: [D,D] (PyTorch Linear layout [out,in]); b*: [D].
    Returns [B,S,D] in q.dtype.
    """
    B, S, D = q.shape
    assert D % num_heads == 0
    H = num_heads
    dk = D // H
    out_dtype = q.dtype
    cdt = jnp.dtype(compute_dtype)

    vmem_cap = _vmem_capacity_bytes()
    tb = _pick_batch_tile(B, S, D, H, dk, cdt.itemsize,
                          jnp.dtype(out_dtype).itemsize, cdt.itemsize, vmem_cap)
    if max_batch_tile is not None:
        tb = max(1, min(tb, int(max_batch_tile)))
    # Dual-TensorCore chips (v7x): keep >=2 grid steps so both cores get work;
    # single-TC chips (v5e/v6e) just take the largest tile that fits.
    if _is_dual_tensorcore_chip() and B >= 2:
        tb = min(tb, (B + 1) // 2)
    Bp = _round_up(B, tb)

    # 2-D lane-dense I/O: (B*S, D). Cast inputs to the compute dtype host-side
    # so the q/k/v DMA bytes are halved too (bf16 path).
    def rows(x):
        x2 = x.reshape(B * S, D).astype(cdt)
        if Bp != B:
            x2 = jnp.pad(x2, ((0, (Bp - B) * S), (0, 0)))
        return x2

    q2, k2, v2 = rows(q), rows(k), rows(v)

    # Head-major weight layouts (host-side) so the kernel never slices the lane
    # axis at non-128-multiple offsets:
    #   wq_h[h] = Wq^T[:, h*dk:(h+1)*dk]  -> (H, D, dk)
    #   wm_h[h] = Wm^T[h*dk:(h+1)*dk, :]  -> (H, dk, D)
    wq_h = wq.T.reshape(D, H, dk).transpose(1, 0, 2).astype(cdt)
    wk_h = wk.T.reshape(D, H, dk).transpose(1, 0, 2).astype(cdt)
    wv_h = wv.T.reshape(D, H, dk).transpose(1, 0, 2).astype(cdt)
    wm_h = wm.T.reshape(H, dk, D).astype(cdt)
    bq_h = bq.reshape(H, 1, dk).astype(jnp.float32)
    bk_h = bk.reshape(H, 1, dk).astype(jnp.float32)
    bv_h = bv.reshape(H, 1, dk).astype(jnp.float32)
    bm_2 = bm.reshape(1, D).astype(jnp.float32)

    vmem_limit = int(min(vmem_cap * 0.85, 128 * 1024 * 1024))
    args = (q2, k2, v2, wq_h, wk_h, wv_h, wm_h, bq_h, bk_h, bv_h, bm_2)

    try:
        out2d = _build_call(Bp, tb, S, D, H, dk, out_dtype, cdt,
                            single_buffer_weights=True,
                            vmem_limit_bytes=vmem_limit)(*args)
    except Exception:
        # Fallback if single-buffered invariant operands (pl.Buffered(1)) are
        # not supported by the installed Pallas version.
        out2d = _build_call(Bp, tb, S, D, H, dk, out_dtype, cdt,
                            single_buffer_weights=False,
                            vmem_limit_bytes=vmem_limit)(*args)

    return out2d[:B * S].reshape(B, S, D)


# ---------------------------------------------------------------------------
# Reference + test
# ---------------------------------------------------------------------------
def _xavier_uniform(key, shape, gain=1.0):
    fan_out, fan_in = shape
    bound = gain * (6.0 / (fan_in + fan_out)) ** 0.5
    return jax.random.uniform(key, shape, minval=-bound, maxval=bound,
                              dtype=jnp.float32)


def _reference(q, k, v, wq, bq, wk, bk, wv, bv, wm, bm, num_heads):
    # Pure-JAX mirror of the PyTorch forward (eval mode).
    B, S, D = q.shape
    dk = D // num_heads
    hp = lax.Precision.HIGHEST

    def lin(x, w, b):
        return jnp.einsum("bsd,od->bso", x, w, precision=hp) + b

    qp = lin(q, wq, bq).reshape(B, S, num_heads, dk).transpose(0, 2, 1, 3)
    kp = lin(k, wk, bk).reshape(B, S, num_heads, dk).transpose(0, 2, 1, 3)
    vp = lin(v, wv, bv).reshape(B, S, num_heads, dk).transpose(0, 2, 1, 3)

    s = jnp.einsum("bhqd,bhkd->bhqk", qp, kp, precision=hp) / jnp.sqrt(jnp.float32(dk))
    att = jax.nn.softmax(s, axis=-1)
    o = jnp.einsum("bhqk,bhkd->bhqd", att, vp, precision=hp)
    o = o.transpose(0, 2, 1, 3).reshape(B, S, D)
    return jnp.einsum("bsd,od->bso", o, wm, precision=hp) + bm


if __name__ == "__main__":
    B, S, d_model, n_heads = 2, 8, 32, 4

    key = jax.random.PRNGKey(0)
    keys = jax.random.split(key, 11)

    wq = _xavier_uniform(keys[0], (d_model, d_model))
    wk = _xavier_uniform(keys[1], (d_model, d_model))
    wv = _xavier_uniform(keys[2], (d_model, d_model))
    wm = _xavier_uniform(keys[3], (d_model, d_model))

    bb = 1.0 / d_model ** 0.5   # PyTorch Linear default bias init range
    bq = jax.random.uniform(keys[4], (d_model,), minval=-bb, maxval=bb)
    bk = jax.random.uniform(keys[5], (d_model,), minval=-bb, maxval=bb)
    bv = jax.random.uniform(keys[6], (d_model,), minval=-bb, maxval=bb)
    bm = jax.random.uniform(keys[7], (d_model,), minval=-bb, maxval=bb)

    q = jax.random.normal(keys[8], (B, S, d_model), dtype=jnp.float32)
    k = jax.random.normal(keys[9], (B, S, d_model), dtype=jnp.float32)
    v = jax.random.normal(keys[10], (B, S, d_model), dtype=jnp.float32)

    out = sparse_mhatt(q, k, v, wq, bq, wk, bk, wv, bv, wm, bm,
                       num_heads=n_heads)            # default bf16 MXU operands
    out = jax.block_until_ready(out)

    ref = _reference(q, k, v, wq, bq, wk, bk, wv, bv, wm, bm, n_heads)
    assert out.shape == (B, S, d_model)
    # bf16 matmul operands (f32 accumulation) -> loosened tolerance vs f32 ref.
    assert jnp.allclose(out, ref, atol=3e-2, rtol=3e-2), "mismatch vs reference"

    print("KERNEL_OK")
</pallas_src>

<mosaic_0001>
module attributes {stable_mosaic.version = 11 : i64} {
  func.func @_mha_kernel(%arg0: i32, %arg1: memref<16x32xbf16, #tpu.memory_space<vmem>>, %arg2: memref<16x32xbf16, #tpu.memory_space<vmem>>, %arg3: memref<16x32xbf16, #tpu.memory_space<vmem>>, %arg4: memref<4x32x8xbf16, #tpu.memory_space<vmem>>, %arg5: memref<4x32x8xbf16, #tpu.memory_space<vmem>>, %arg6: memref<4x32x8xbf16, #tpu.memory_space<vmem>>, %arg7: memref<4x8x32xbf16, #tpu.memory_space<vmem>>, %arg8: memref<4x1x8xf32, #tpu.memory_space<vmem>>, %arg9: memref<4x1x8xf32, #tpu.memory_space<vmem>>, %arg10: memref<4x1x8xf32, #tpu.memory_space<vmem>>, %arg11: memref<1x32xf32, #tpu.memory_space<vmem>>, %arg12: memref<16x32xf32, #tpu.memory_space<vmem>>, %arg13: memref<4x2x8x8xbf16, #tpu.memory_space<vmem>>, %arg14: memref<4x2x8x8xbf16, #tpu.memory_space<vmem>>, %arg15: memref<4x2x8x8xbf16, #tpu.memory_space<vmem>>) attributes {dimension_semantics = [#tpu.dimension_semantics<parallel>], iteration_bounds = array<i64: 1>, scalar_prefetch = 0 : i64, scratch_operands = 3 : i64, tpu.core_type = #tpu.core_type<tc>, window_params = [{transform_indices = @transform_0, window_bounds = array<i64: 16, 32>}, {transform_indices = @transform_1, window_bounds = array<i64: 16, 32>}, {transform_indices = @transform_2, window_bounds = array<i64: 16, 32>}, {pipeline_mode = #tpu.pipeline_mode<synchronous>, transform_indices = @transform_3, window_bounds = array<i64: 4, 32, 8>}, {pipeline_mode = #tpu.pipeline_mode<synchronous>, transform_indices = @transform_4, window_bounds = array<i64: 4, 32, 8>}, {pipeline_mode = #tpu.pipeline_mode<synchronous>, transform_indices = @transform_5, window_bounds = array<i64: 4, 32, 8>}, {pipeline_mode = #tpu.pipeline_mode<synchronous>, transform_indices = @transform_6, window_bounds = array<i64: 4, 8, 32>}, {pipeline_mode = #tpu.pipeline_mode<synchronous>, transform_indices = @transform_7, window_bounds = array<i64: 4, 1, 8>}, {pipeline_mode = #tpu.pipeline_mode<synchronous>, transform_indices = @transform_8, window_bounds = array<i64: 4, 1, 8>}, {pipeline_mode = #tpu.pipeline_mode<synchronous>, transform_indices = @transform_9, window_bounds = array<i64: 4, 1, 8>}, {pipeline_mode = #tpu.pipeline_mode<synchronous>, transform_indices = @transform_10, window_bounds = array<i64: 1, 32>}, {transform_indices = @transform_11, window_bounds = array<i64: 16, 32>}]} {
    %c0 = arith.constant 0 : index
    %c0_0 = arith.constant 0 : index
    %0 = vector.load %arg1[%c0, %c0_0] : memref<16x32xbf16, #tpu.memory_space<vmem>>, vector<16x32xbf16>
    %c0_1 = arith.constant 0 : index
    %c0_2 = arith.constant 0 : index
    %1 = vector.load %arg2[%c0_1, %c0_2] : memref<16x32xbf16, #tpu.memory_space<vmem>>, vector<16x32xbf16>
    %c0_3 = arith.constant 0 : index
    %c0_4 = arith.constant 0 : index
    %2 = vector.load %arg3[%c0_3, %c0_4] : memref<16x32xbf16, #tpu.memory_space<vmem>>, vector<16x32xbf16>
    %c0_i32 = arith.constant 0 : i32
    %3 = arith.index_cast %c0_i32 : i32 to index
    %c0_5 = arith.constant 0 : index
    %c0_6 = arith.constant 0 : index
    %4 = vector.load %arg4[%3, %c0_5, %c0_6] : memref<4x32x8xbf16, #tpu.memory_space<vmem>>, vector<1x32x8xbf16>
    %5 = vector.shape_cast %4 : vector<1x32x8xbf16> to vector<32x8xbf16>
    %cst = arith.constant dense<0.000000e+00> : vector<16x8xf32>
    %6 = tpu.matmul %0, %5, %cst {dimension_numbers = #tpu.dot_dimension_numbers<[1], [0], [0], [1], [0, 0, 1, 1], [], []>} : vector<16x32xbf16>, vector<32x8xbf16>, vector<16x8xf32> -> vector<16x8xf32>
    %7 = arith.index_cast %c0_i32 : i32 to index
    %c0_7 = arith.constant 0 : index
    %c0_8 = arith.constant 0 : index
    %8 = vector.load %arg8[%7, %c0_7, %c0_8] : memref<4x1x8xf32, #tpu.memory_space<vmem>>, vector<1x1x8xf32>
    %9 = vector.shape_cast %8 : vector<1x1x8xf32> to vector<1x8xf32>
    %10 = vector.broadcast %9 : vector<1x8xf32> to vector<16x8xf32>
    %11 = arith.addf %6, %10 : vector<16x8xf32>
    %12 = arith.index_cast %c0_i32 : i32 to index
    %c0_9 = arith.constant 0 : index
    %c0_10 = arith.constant 0 : index
    %13 = vector.load %arg5[%12, %c0_9, %c0_10] : memref<4x32x8xbf16, #tpu.memory_space<vmem>>, vector<1x32x8xbf16>
    %14 = vector.shape_cast %13 : vector<1x32x8xbf16> to vector<32x8xbf16>
    %cst_11 = arith.constant dense<0.000000e+00> : vector<16x8xf32>
    %15 = tpu.matmul %1, %14, %cst_11 {dimension_numbers = #tpu.dot_dimension_numbers<[1], [0], [0], [1], [0, 0, 1, 1], [], []>} : vector<16x32xbf16>, vector<32x8xbf16>, vector<16x8xf32> -> vector<16x8xf32>
    %16 = arith.index_cast %c0_i32 : i32 to index
    %c0_12 = arith.constant 0 : index
    %c0_13 = arith.constant 0 : index
    %17 = vector.load %arg9[%16, %c0_12, %c0_13] : memref<4x1x8xf32, #tpu.memory_space<vmem>>, vector<1x1x8xf32>
    %18 = vector.shape_cast %17 : vector<1x1x8xf32> to vector<1x8xf32>
    %19 = vector.broadcast %18 : vector<1x8xf32> to vector<16x8xf32>
    %20 = arith.addf %15, %19 : vector<16x8xf32>
    %21 = arith.index_cast %c0_i32 : i32 to index
    %c0_14 = arith.constant 0 : index
    %c0_15 = arith.constant 0 : index
    %22 = vector.load %arg6[%21, %c0_14, %c0_15] : memref<4x32x8xbf16, #tpu.memory_space<vmem>>, vector<1x32x8xbf16>
    %23 = vector.shape_cast %22 : vector<1x32x8xbf16> to vector<32x8xbf16>
    %cst_16 = arith.constant dense<0.000000e+00> : vector<16x8xf32>
    %24 = tpu.matmul %2, %23, %cst_16 {dimension_numbers = #tpu.dot_dimension_numbers<[1], [0], [0], [1], [0, 0, 1, 1], [], []>} : vector<16x32xbf16>, vector<32x8xbf16>, vector<16x8xf32> -> vector<16x8xf32>
    %25 = arith.index_cast %c0_i32 : i32 to index
    %c0_17 = arith.constant 0 : index
    %c0_18 = arith.constant 0 : index
    %26 = vector.load %arg10[%25, %c0_17, %c0_18] : memref<4x1x8xf32, #tpu.memory_space<vmem>>, vector<1x1x8xf32>
    %27 = vector.shape_cast %26 : vector<1x1x8xf32> to vector<1x8xf32>
    %28 = vector.broadcast %27 : vector<1x8xf32> to vector<16x8xf32>
    %29 = arith.addf %24, %28 : vector<16x8xf32>
    %30 = vector.shape_cast %11 : vector<16x8xf32> to vector<2x8x8xf32>
    %31 = arith.truncf %30 : vector<2x8x8xf32> to vector<2x8x8xbf16>
    %32 = arith.index_cast %c0_i32 : i32 to index
    %c0_19 = arith.constant 0 : index
    %c0_20 = arith.constant 0 : index
    %c0_21 = arith.constant 0 : index
    %33 = vector.load %arg13[%32, %c0_19, %c0_20, %c0_21] : memref<4x2x8x8xbf16, #tpu.memory_space<vmem>>, vector<1x2x8x8xbf16>
    %34 = vector.shape_cast %33 : vector<1x2x8x8xbf16> to vector<2x8x8xbf16>
    %35 = vector.shape_cast %31 : vector<2x8x8xbf16> to vector<1x2x8x8xbf16>
    tpu.vector_store %arg13[%32, %c0_19, %c0_20, %c0_21], %35 {strides = array<i32>} : memref<4x2x8x8xbf16, #tpu.memory_space<vmem>>, vector<1x2x8x8xbf16>,
    %36 = vector.shape_cast %20 : vector<16x8xf32> to vector<2x8x8xf32>
    %37 = arith.truncf %36 : vector<2x8x8xf32> to vector<2x8x8xbf16>
    %38 = arith.index_cast %c0_i32 : i32 to index
    %c0_22 = arith.constant 0 : index
    %c0_23 = arith.constant 0 : index
    %c0_24 = arith.constant 0 : index
    %39 = vector.load %arg14[%38, %c0_22, %c0_23, %c0_24] : memref<4x2x8x8xbf16, #tpu.memory_space<vmem>>, vector<1x2x8x8xbf16>
    %40 = vector.shape_cast %39 : vector<1x2x8x8xbf16> to vector<2x8x8xbf16>
    %41 = vector.shape_cast %37 : vector<2x8x8xbf16> to vector<1x2x8x8xbf16>
    tpu.vector_store %arg14[%38, %c0_22, %c0_23, %c0_24], %41 {strides = array<i32>} : memref<4x2x8x8xbf16, #tpu.memory_space<vmem>>, vector<1x2x8x8xbf16>,
    %42 = vector.shape_cast %29 : vector<16x8xf32> to vector<2x8x8xf32>
    %43 = arith.truncf %42 : vector<2x8x8xf32> to vector<2x8x8xbf16>
    %44 = arith.index_cast %c0_i32 : i32 to index
    %c0_25 = arith.constant 0 : index
    %c0_26 = arith.constant 0 : index
    %c0_27 = arith.constant 0 : index
    %45 = vector.load %arg15[%44, %c0_25, %c0_26, %c0_27] : memref<4x2x8x8xbf16, #tpu.memory_space<vmem>>, vector<1x2x8x8xbf16>
    %46 = vector.shape_cast %45 : vector<1x2x8x8xbf16> to vector<2x8x8xbf16>
    %47 = vector.shape_cast %43 : vector<2x8x8xbf16> to vector<1x2x8x8xbf16>
    tpu.vector_store %arg15[%44, %c0_25, %c0_26, %c0_27], %47 {strides = array<i32>} : memref<4x2x8x8xbf16, #tpu.memory_space<vmem>>, vector<1x2x8x8xbf16>,
    %c1_i32 = arith.constant 1 : i32
    %48 = arith.index_cast %c1_i32 : i32 to index
    %c0_28 = arith.constant 0 : index
    %c0_29 = arith.constant 0 : index
    %49 = vector.load %arg4[%48, %c0_28, %c0_29] : memref<4x32x8xbf16, #tpu.memory_space<vmem>>, vector<1x32x8xbf16>
    %50 = vector.shape_cast %49 : vector<1x32x8xbf16> to vector<32x8xbf16>
    %cst_30 = arith.constant dense<0.000000e+00> : vector<16x8xf32>
    %51 = tpu.matmul %0, %50, %cst_30 {dimension_numbers = #tpu.dot_dimension_numbers<[1], [0], [0], [1], [0, 0, 1, 1], [], []>} : vector<16x32xbf16>, vector<32x8xbf16>, vector<16x8xf32> -> vector<16x8xf32>
    %52 = arith.index_cast %c1_i32 : i32 to index
    %c0_31 = arith.constant 0 : index
    %c0_32 = arith.constant 0 : index
    %53 = vector.load %arg8[%52, %c0_31, %c0_32] : memref<4x1x8xf32, #tpu.memory_space<vmem>>, vector<1x1x8xf32>
    %54 = vector.shape_cast %53 : vector<1x1x8xf32> to vector<1x8xf32>
    %55 = vector.broadcast %54 : vector<1x8xf32> to vector<16x8xf32>
    %56 = arith.addf %51, %55 : vector<16x8xf32>
    %57 = arith.index_cast %c1_i32 : i32 to index
    %c0_33 = arith.constant 0 : index
    %c0_34 = arith.constant 0 : index
    %58 = vector.load %arg5[%57, %c0_33, %c0_34] : memref<4x32x8xbf16, #tpu.memory_space<vmem>>, vector<1x32x8xbf16>
    %59 = vector.shape_cast %58 : vector<1x32x8xbf16> to vector<32x8xbf16>
    %cst_35 = arith.constant dense<0.000000e+00> : vector<16x8xf32>
    %60 = tpu.matmul %1, %59, %cst_35 {dimension_numbers = #tpu.dot_dimension_numbers<[1], [0], [0], [1], [0, 0, 1, 1], [], []>} : vector<16x32xbf16>, vector<32x8xbf16>, vector<16x8xf32> -> vector<16x8xf32>
    %61 = arith.index_cast %c1_i32 : i32 to index
    %c0_36 = arith.constant 0 : index
    %c0_37 = arith.constant 0 : index
    %62 = vector.load %arg9[%61, %c0_36, %c0_37] : memref<4x1x8xf32, #tpu.memory_space<vmem>>, vector<1x1x8xf32>
    %63 = vector.shape_cast %62 : vector<1x1x8xf32> to vector<1x8xf32>
    %64 = vector.broadcast %63 : vector<1x8xf32> to vector<16x8xf32>
    %65 = arith.addf %60, %64 : vector<16x8xf32>
    %66 = arith.index_cast %c1_i32 : i32 to index
    %c0_38 = arith.constant 0 : index
    %c0_39 = arith.constant 0 : index
    %67 = vector.load %arg6[%66, %c0_38, %c0_39] : memref<4x32x8xbf16, #tpu.memory_space<vmem>>, vector<1x32x8xbf16>
    %68 = vector.shape_cast %67 : vector<1x32x8xbf16> to vector<32x8xbf16>
    %cst_40 = arith.constant dense<0.000000e+00> : vector<16x8xf32>
    %69 = tpu.matmul %2, %68, %cst_40 {dimension_numbers = #tpu.dot_dimension_numbers<[1], [0], [0], [1], [0, 0, 1, 1], [], []>} : vector<16x32xbf16>, vector<32x8xbf16>, vector<16x8xf32> -> vector<16x8xf32>
    %70 = arith.index_cast %c1_i32 : i32 to index
    %c0_41 = arith.constant 0 : index
    %c0_42 = arith.constant 0 : index
    %71 = vector.load %arg10[%70, %c0_41, %c0_42] : memref<4x1x8xf32, #tpu.memory_space<vmem>>, vector<1x1x8xf32>
    %72 = vector.shape_cast %71 : vector<1x1x8xf32> to vector<1x8xf32>
    %73 = vector.broadcast %72 : vector<1x8xf32> to vector<16x8xf32>
    %74 = arith.addf %69, %73 : vector<16x8xf32>
    %75 = vector.shape_cast %56 : vector<16x8xf32> to vector<2x8x8xf32>
    %76 = arith.truncf %75 : vector<2x8x8xf32> to vector<2x8x8xbf16>
    %77 = arith.index_cast %c1_i32 : i32 to index
    %c0_43 = arith.constant 0 : index
    %c0_44 = arith.constant 0 : index
    %c0_45 = arith.constant 0 : index
    %78 = vector.load %arg13[%77, %c0_43, %c0_44, %c0_45] : memref<4x2x8x8xbf16, #tpu.memory_space<vmem>>, vector<1x2x8x8xbf16>
    %79 = vector.shape_cast %78 : vector<1x2x8x8xbf16> to vector<2x8x8xbf16>
    %80 = vector.shape_cast %76 : vector<2x8x8xbf16> to vector<1x2x8x8xbf16>
    tpu.vector_store %arg13[%77, %c0_43, %c0_44, %c0_45], %80 {strides = array<i32>} : memref<4x2x8x8xbf16, #tpu.memory_space<vmem>>, vector<1x2x8x8xbf16>,
    %81 = vector.shape_cast %65 : vector<16x8xf32> to vector<2x8x8xf32>
    %82 = arith.truncf %81 : vector<2x8x8xf32> to vector<2x8x8xbf16>
    %83 = arith.index_cast %c1_i32 : i32 to index
    %c0_46 = arith.constant 0 : index
    %c0_47 = arith.constant 0 : index
    %c0_48 = arith.constant 0 : index
    %84 = vector.load %arg14[%83, %c0_46, %c0_47, %c0_48] : memref<4x2x8x8xbf16, #tpu.memory_space<vmem>>, vector<1x2x8x8xbf16>
    %85 = vector.shape_cast %84 : vector<1x2x8x8xbf16> to vector<2x8x8xbf16>
    %86 = vector.shape_cast %82 : vector<2x8x8xbf16> to vector<1x2x8x8xbf16>
    tpu.vector_store %arg14[%83, %c0_46, %c0_47, %c0_48], %86 {strides = array<i32>} : memref<4x2x8x8xbf16, #tpu.memory_space<vmem>>, vector<1x2x8x8xbf16>,
    %87 = vector.shape_cast %74 : vector<16x8xf32> to vector<2x8x8xf32>
    %88 = arith.truncf %87 : vector<2x8x8xf32> to vector<2x8x8xbf16>
    %89 = arith.index_cast %c1_i32 : i32 to index
    %c0_49 = arith.constant 0 : index
    %c0_50 = arith.constant 0 : index
    %c0_51 = arith.constant 0 : index
    %90 = vector.load %arg15[%89, %c0_49, %c0_50, %c0_51] : memref<4x2x8x8xbf16, #tpu.memory_space<vmem>>, vector<1x2x8x8xbf16>
    %91 = vector.shape_cast %90 : vector<1x2x8x8xbf16> to vector<2x8x8xbf16>
    %92 = vector.shape_cast %88 : vector<2x8x8xbf16> to vector<1x2x8x8xbf16>
    tpu.vector_store %arg15[%89, %c0_49, %c0_50, %c0_51], %92 {strides = array<i32>} : memref<4x2x8x8xbf16, #tpu.memory_space<vmem>>, vector<1x2x8x8xbf16>,
    %c2_i32 = arith.constant 2 : i32
    %93 = arith.index_cast %c2_i32 : i32 to index
    %c0_52 = arith.constant 0 : index
    %c0_53 = arith.constant 0 : index
    %94 = vector.load %arg4[%93, %c0_52, %c0_53] : memref<4x32x8xbf16, #tpu.memory_space<vmem>>, vector<1x32x8xbf16>
    %95 = vector.shape_cast %94 : vector<1x32x8xbf16> to vector<32x8xbf16>
    %cst_54 = arith.constant dense<0.000000e+00> : vector<16x8xf32>
    %96 = tpu.matmul %0, %95, %cst_54 {dimension_numbers = #tpu.dot_dimension_numbers<[1], [0], [0], [1], [0, 0, 1, 1], [], []>} : vector<16x32xbf16>, vector<32x8xbf16>, vector<16x8xf32> -> vector<16x8xf32>
    %97 = arith.index_cast %c2_i32 : i32 to index
    %c0_55 = arith.constant 0 : index
    %c0_56 = arith.constant 0 : index
    %98 = vector.load %arg8[%97, %c0_55, %c0_56] : memref<4x1x8xf32, #tpu.memory_space<vmem>>, vector<1x1x8xf32>
    %99 = vector.shape_cast %98 : vector<1x1x8xf32> to vector<1x8xf32>
    %100 = vector.broadcast %99 : vector<1x8xf32> to vector<16x8xf32>
    %101 = arith.addf %96, %100 : vector<16x8xf32>
    %102 = arith.index_cast %c2_i32 : i32 to index
    %c0_57 = arith.constant 0 : index
    %c0_58 = arith.constant 0 : index
    %103 = vector.load %arg5[%102, %c0_57, %c0_58] : memref<4x32x8xbf16, #tpu.memory_space<vmem>>, vector<1x32x8xbf16>
    %104 = vector.shape_cast %103 : vector<1x32x8xbf16> to vector<32x8xbf16>
    %cst_59 = arith.constant dense<0.000000e+00> : vector<16x8xf32>
    %105 = tpu.matmul %1, %104, %cst_59 {dimension_numbers = #tpu.dot_dimension_numbers<[1], [0], [0], [1], [0, 0, 1, 1], [], []>} : vector<16x32xbf16>, vector<32x8xbf16>, vector<16x8xf32> -> vector<16x8xf32>
    %106 = arith.index_cast %c2_i32 : i32 to index
    %c0_60 = arith.constant 0 : index
    %c0_61 = arith.constant 0 : index
    %107 = vector.load %arg9[%106, %c0_60, %c0_61] : memref<4x1x8xf32, #tpu.memory_space<vmem>>, vector<1x1x8xf32>
    %108 = vector.shape_cast %107 : vector<1x1x8xf32> to vector<1x8xf32>
    %109 = vector.broadcast %108 : vector<1x8xf32> to vector<16x8xf32>
    %110 = arith.addf %105, %109 : vector<16x8xf32>
    %111 = arith.index_cast %c2_i32 : i32 to index
    %c0_62 = arith.constant 0 : index
    %c0_63 = arith.constant 0 : index
    %112 = vector.load %arg6[%111, %c0_62, %c0_63] : memref<4x32x8xbf16, #tpu.memory_space<vmem>>, vector<1x32x8xbf16>
    %113 = vector.shape_cast %112 : vector<1x32x8xbf16> to vector<32x8xbf16>
    %cst_64 = arith.constant dense<0.000000e+00> : vector<16x8xf32>
    %114 = tpu.matmul %2, %113, %cst_64 {dimension_numbers = #tpu.dot_dimension_numbers<[1], [0], [0], [1], [0, 0, 1, 1], [], []>} : vector<16x32xbf16>, vector<32x8xbf16>, vector<16x8xf32> -> vector<16x8xf32>
    %115 = arith.index_cast %c2_i32 : i32 to index
    %c0_65 = arith.constant 0 : index
    %c0_66 = arith.constant 0 : index
    %116 = vector.load %arg10[%115, %c0_65, %c0_66] : memref<4x1x8xf32, #tpu.memory_space<vmem>>, vector<1x1x8xf32>
    %117 = vector.shape_cast %116 : vector<1x1x8xf32> to vector<1x8xf32>
    %118 = vector.broadcast %117 : vector<1x8xf32> to vector<16x8xf32>
    %119 = arith.addf %114, %118 : vector<16x8xf32>
    %120 = vector.shape_cast %101 : vector<16x8xf32> to vector<2x8x8xf32>
    %121 = arith.truncf %120 : vector<2x8x8xf32> to vector<2x8x8xbf16>
    %122 = arith.index_cast %c2_i32 : i32 to index
    %c0_67 = arith.constant 0 : index
    %c0_68 = arith.constant 0 : index
    %c0_69 = arith.constant 0 : index
    %123 = vector.load %arg13[%122, %c0_67, %c0_68, %c0_69] : memref<4x2x8x8xbf16, #tpu.memory_space<vmem>>, vector<1x2x8x8xbf16>
    %124 = vector.shape_cast %123 : vector<1x2x8x8xbf16> to vector<2x8x8xbf16>
    %125 = vector.shape_cast %121 : vector<2x8x8xbf16> to vector<1x2x8x8xbf16>
    tpu.vector_store %arg13[%122, %c0_67, %c0_68, %c0_69], %125 {strides = array<i32>} : memref<4x2x8x8xbf16, #tpu.memory_space<vmem>>, vector<1x2x8x8xbf16>,
    %126 = vector.shape_cast %110 : vector<16x8xf32> to vector<2x8x8xf32>
    %127 = arith.truncf %126 : vector<2x8x8xf32> to vector<2x8x8xbf16>
    %128 = arith.index_cast %c2_i32 : i32 to index
    %c0_70 = arith.constant 0 : index
    %c0_71 = arith.constant 0 : index
    %c0_72 = arith.constant 0 : index
    %129 = vector.load %arg14[%128, %c0_70, %c0_71, %c0_72] : memref<4x2x8x8xbf16, #tpu.memory_space<vmem>>, vector<1x2x8x8xbf16>
    %130 = vector.shape_cast %129 : vector<1x2x8x8xbf16> to vector<2x8x8xbf16>
    %131 = vector.shape_cast %127 : vector<2x8x8xbf16> to vector<1x2x8x8xbf16>
    tpu.vector_store %arg14[%128, %c0_70, %c0_71, %c0_72], %131 {strides = array<i32>} : memref<4x2x8x8xbf16, #tpu.memory_space<vmem>>, vector<1x2x8x8xbf16>,
    %132 = vector.shape_cast %119 : vector<16x8xf32> to vector<2x8x8xf32>
    %133 = arith.truncf %132 : vector<2x8x8xf32> to vector<2x8x8xbf16>
    %134 = arith.index_cast %c2_i32 : i32 to index
    %c0_73 = arith.constant 0 : index
    %c0_74 = arith.constant 0 : index
    %c0_75 = arith.constant 0 : index
    %135 = vector.load %arg15[%134, %c0_73, %c0_74, %c0_75] : memref<4x2x8x8xbf16, #tpu.memory_space<vmem>>, vector<1x2x8x8xbf16>
    %136 = vector.shape_cast %135 : vector<1x2x8x8xbf16> to vector<2x8x8xbf16>
    %137 = vector.shape_cast %133 : vector<2x8x8xbf16> to vector<1x2x8x8xbf16>
    tpu.vector_store %arg15[%134, %c0_73, %c0_74, %c0_75], %137 {strides = array<i32>} : memref<4x2x8x8xbf16, #tpu.memory_space<vmem>>, vector<1x2x8x8xbf16>,
    %c3_i32 = arith.constant 3 : i32
    %138 = arith.index_cast %c3_i32 : i32 to index
    %c0_76 = arith.constant 0 : index
    %c0_77 = arith.constant 0 : index
    %139 = vector.load %arg4[%138, %c0_76, %c0_77] : memref<4x32x8xbf16, #tpu.memory_space<vmem>>, vector<1x32x8xbf16>
    %140 = vector.shape_cast %139 : vector<1x32x8xbf16> to vector<32x8xbf16>
    %cst_78 = arith.constant dense<0.000000e+00> : vector<16x8xf32>
    %141 = tpu.matmul %0, %140, %cst_78 {dimension_numbers = #tpu.dot_dimension_numbers<[1], [0], [0], [1], [0, 0, 1, 1], [], []>} : vector<16x32xbf16>, vector<32x8xbf16>, vector<16x8xf32> -> vector<16x8xf32>
    %142 = arith.index_cast %c3_i32 : i32 to index
    %c0_79 = arith.constant 0 : index
    %c0_80 = arith.constant 0 : index
    %143 = vector.load %arg8[%142, %c0_79, %c0_80] : memref<4x1x8xf32, #tpu.memory_space<vmem>>, vector<1x1x8xf32>
    %144 = vector.shape_cast %143 : vector<1x1x8xf32> to vector<1x8xf32>
    %145 = vector.broadcast %144 : vector<1x8xf32> to vector<16x8xf32>
    %146 = arith.addf %141, %145 : vector<16x8xf32>
    %147 = arith.index_cast %c3_i32 : i32 to index
    %c0_81 = arith.constant 0 : index
    %c0_82 = arith.constant 0 : index
    %148 = vector.load %arg5[%147, %c0_81, %c0_82] : memref<4x32x8xbf16, #tpu.memory_space<vmem>>, vector<1x32x8xbf16>
    %149 = vector.shape_cast %148 : vector<1x32x8xbf16> to vector<32x8xbf16>
    %cst_83 = arith.constant dense<0.000000e+00> : vector<16x8xf32>
    %150 = tpu.matmul %1, %149, %cst_83 {dimension_numbers = #tpu.dot_dimension_numbers<[1], [0], [0], [1], [0, 0, 1, 1], [], []>} : vector<16x32xbf16>, vector<32x8xbf16>, vector<16x8xf32> -> vector<16x8xf32>
    %151 = arith.index_cast %c3_i32 : i32 to index
    %c0_84 = arith.constant 0 : index
    %c0_85 = arith.constant 0 : index
    %152 = vector.load %arg9[%151, %c0_84, %c0_85] : memref<4x1x8xf32, #tpu.memory_space<vmem>>, vector<1x1x8xf32>
    %153 = vector.shape_cast %152 : vector<1x1x8xf32> to vector<1x8xf32>
    %154 = vector.broadcast %153 : vector<1x8xf32> to vector<16x8xf32>
    %155 = arith.addf %150, %154 : vector<16x8xf32>
    %156 = arith.index_cast %c3_i32 : i32 to index
    %c0_86 = arith.constant 0 : index
    %c0_87 = arith.constant 0 : index
    %157 = vector.load %arg6[%156, %c0_86, %c0_87] : memref<4x32x8xbf16, #tpu.memory_space<vmem>>, vector<1x32x8xbf16>
    %158 = vector.shape_cast %157 : vector<1x32x8xbf16> to vector<32x8xbf16>
    %cst_88 = arith.constant dense<0.000000e+00> : vector<16x8xf32>
    %159 = tpu.matmul %2, %158, %cst_88 {dimension_numbers = #tpu.dot_dimension_numbers<[1], [0], [0], [1], [0, 0, 1, 1], [], []>} : vector<16x32xbf16>, vector<32x8xbf16>, vector<16x8xf32> -> vector<16x8xf32>
    %160 = arith.index_cast %c3_i32 : i32 to index
    %c0_89 = arith.constant 0 : index
    %c0_90 = arith.constant 0 : index
    %161 = vector.load %arg10[%160, %c0_89, %c0_90] : memref<4x1x8xf32, #tpu.memory_space<vmem>>, vector<1x1x8xf32>
    %162 = vector.shape_cast %161 : vector<1x1x8xf32> to vector<1x8xf32>
    %163 = vector.broadcast %162 : vector<1x8xf32> to vector<16x8xf32>
    %164 = arith.addf %159, %163 : vector<16x8xf32>
    %165 = vector.shape_cast %146 : vector<16x8xf32> to vector<2x8x8xf32>
    %166 = arith.truncf %165 : vector<2x8x8xf32> to vector<2x8x8xbf16>
    %167 = arith.index_cast %c3_i32 : i32 to index
    %c0_91 = arith.constant 0 : index
    %c0_92 = arith.constant 0 : index
    %c0_93 = arith.constant 0 : index
    %168 = vector.load %arg13[%167, %c0_91, %c0_92, %c0_93] : memref<4x2x8x8xbf16, #tpu.memory_space<vmem>>, vector<1x2x8x8xbf16>
    %169 = vector.shape_cast %168 : vector<1x2x8x8xbf16> to vector<2x8x8xbf16>
    %170 = vector.shape_cast %166 : vector<2x8x8xbf16> to vector<1x2x8x8xbf16>
    tpu.vector_store %arg13[%167, %c0_91, %c0_92, %c0_93], %170 {strides = array<i32>} : memref<4x2x8x8xbf16, #tpu.memory_space<vmem>>, vector<1x2x8x8xbf16>,
    %171 = vector.shape_cast %155 : vector<16x8xf32> to vector<2x8x8xf32>
    %172 = arith.truncf %171 : vector<2x8x8xf32> to vector<2x8x8xbf16>
    %173 = arith.index_cast %c3_i32 : i32 to index
    %c0_94 = arith.constant 0 : index
    %c0_95 = arith.constant 0 : index
    %c0_96 = arith.constant 0 : index
    %174 = vector.load %arg14[%173, %c0_94, %c0_95, %c0_96] : memref<4x2x8x8xbf16, #tpu.memory_space<vmem>>, vector<1x2x8x8xbf16>
    %175 = vector.shape_cast %174 : vector<1x2x8x8xbf16> to vector<2x8x8xbf16>
    %176 = vector.shape_cast %172 : vector<2x8x8xbf16> to vector<1x2x8x8xbf16>
    tpu.vector_store %arg14[%173, %c0_94, %c0_95, %c0_96], %176 {strides = array<i32>} : memref<4x2x8x8xbf16, #tpu.memory_space<vmem>>, vector<1x2x8x8xbf16>,
    %177 = vector.shape_cast %164 : vector<16x8xf32> to vector<2x8x8xf32>
    %178 = arith.truncf %177 : vector<2x8x8xf32> to vector<2x8x8xbf16>
    %179 = arith.index_cast %c3_i32 : i32 to index
    %c0_97 = arith.constant 0 : index
    %c0_98 = arith.constant 0 : index
    %c0_99 = arith.constant 0 : index
    %180 = vector.load %arg15[%179, %c0_97, %c0_98, %c0_99] : memref<4x2x8x8xbf16, #tpu.memory_space<vmem>>, vector<1x2x8x8xbf16>
    %181 = vector.shape_cast %180 : vector<1x2x8x8xbf16> to vector<2x8x8xbf16>
    %182 = vector.shape_cast %178 : vector<2x8x8xbf16> to vector<1x2x8x8xbf16>
    tpu.vector_store %arg15[%179, %c0_97, %c0_98, %c0_99], %182 {strides = array<i32>} : memref<4x2x8x8xbf16, #tpu.memory_space<vmem>>, vector<1x2x8x8xbf16>,
    %c4_i32 = arith.constant 4 : i32
    %c0_100 = arith.constant 0 : index
    %c0_101 = arith.constant 0 : index
    %183 = vector.load %arg11[%c0_100, %c0_101] : memref<1x32xf32, #tpu.memory_space<vmem>>, vector<1x32xf32>
    %c0_i32_102 = arith.constant 0 : i32
    %c2_i32_103 = arith.constant 2 : i32
    %184 = arith.addi %c0_i32_102, %c2_i32_103 : i32
    %c1_i32_104 = arith.constant 1 : i32
    scf.for %arg16 = %c0_i32_102 to %184 step %c1_i32_104  : i32 {
      %cst_106 = arith.constant 0.000000e+00 : f32
      %185 = vector.broadcast %cst_106 : f32 to vector<8x32xf32>
      %c0_i32_107 = arith.constant 0 : i32
      %186 = arith.index_cast %c0_i32_107 : i32 to index
      %187 = arith.index_cast %arg16 : i32 to index
      %c0_108 = arith.constant 0 : index
      %c0_109 = arith.constant 0 : index
      %188 = vector.load %arg13[%186, %187, %c0_108, %c0_109] : memref<4x2x8x8xbf16, #tpu.memory_space<vmem>>, vector<1x1x8x8xbf16>
      %189 = vector.shape_cast %188 : vector<1x1x8x8xbf16> to vector<8x8xbf16>
      %190 = arith.index_cast %c0_i32_107 : i32 to index
      %191 = arith.index_cast %arg16 : i32 to index
      %c0_110 = arith.constant 0 : index
      %c0_111 = arith.constant 0 : index
      %192 = vector.load %arg14[%190, %191, %c0_110, %c0_111] : memref<4x2x8x8xbf16, #tpu.memory_space<vmem>>, vector<1x1x8x8xbf16>
      %193 = vector.shape_cast %192 : vector<1x1x8x8xbf16> to vector<8x8xbf16>
      %194 = arith.index_cast %c0_i32_107 : i32 to index
      %195 = arith.index_cast %arg16 : i32 to index
      %c0_112 = arith.constant 0 : index
      %c0_113 = arith.constant 0 : index
      %196 = vector.load %arg15[%194, %195, %c0_112, %c0_113] : memref<4x2x8x8xbf16, #tpu.memory_space<vmem>>, vector<1x1x8x8xbf16>
      %197 = vector.shape_cast %196 : vector<1x1x8x8xbf16> to vector<8x8xbf16>
      %cst_114 = arith.constant dense<0.000000e+00> : vector<8x8xf32>
      %198 = tpu.matmul %189, %193, %cst_114 {dimension_numbers = #tpu.dot_dimension_numbers<[1], [1], [0], [0], [0, 0, 1, 0], [], []>} : vector<8x8xbf16>, vector<8x8xbf16>, vector<8x8xf32> -> vector<8x8xf32>
      %cst_115 = arith.constant 0.353553385 : f32
      %199 = vector.broadcast %cst_115 : f32 to vector<8x8xf32>
      %200 = arith.mulf %198, %199 : vector<8x8xf32>
      %cst_116 = arith.constant dense<0xFF800000> : vector<8xf32>
      %201 = vector.multi_reduction <maximumf>, %200, %cst_116 [1] : vector<8x8xf32> to vector<8xf32>
      %202 = vector.shape_cast %201 : vector<8xf32> to vector<8x1xf32>
      %203 = vector.broadcast %202 : vector<8x1xf32> to vector<8x8xf32>
      %204 = arith.subf %200, %203 : vector<8x8xf32>
      %205 = math.exp %204 : vector<8x8xf32>
      %cst_117 = arith.constant dense<0.000000e+00> : vector<8xf32>
      %206 = vector.multi_reduction <add>, %205, %cst_117 [1] : vector<8x8xf32> to vector<8xf32>
      %207 = vector.shape_cast %206 : vector<8xf32> to vector<8x1xf32>
      %208 = tpu.reciprocal %207 {approx = true} : vector<8x1xf32> -> vector<8x1xf32>
      %209 = vector.broadcast %208 : vector<8x1xf32> to vector<8x8xf32>
      %210 = arith.mulf %205, %209 : vector<8x8xf32>
      %211 = arith.truncf %210 : vector<8x8xf32> to vector<8x8xbf16>
      %cst_118 = arith.constant dense<0.000000e+00> : vector<8x8xf32>
      %212 = tpu.matmul %211, %197, %cst_118 {dimension_numbers = #tpu.dot_dimension_numbers<[1], [0], [0], [1], [0, 0, 1, 1], [], []>} : vector<8x8xbf16>, vector<8x8xbf16>, vector<8x8xf32> -> vector<8x8xf32>
      %213 = arith.truncf %212 : vector<8x8xf32> to vector<8x8xbf16>
      %214 = arith.index_cast %c0_i32_107 : i32 to index
      %c0_119 = arith.constant 0 : index
      %c0_120 = arith.constant 0 : index
      %215 = vector.load %arg7[%214, %c0_119, %c0_120] : memref<4x8x32xbf16, #tpu.memory_space<vmem>>, vector<1x8x32xbf16>
      %216 = vector.shape_cast %215 : vector<1x8x32xbf16> to vector<8x32xbf16>
      %cst_121 = arith.constant dense<0.000000e+00> : vector<8x32xf32>
      %217 = tpu.matmul %213, %216, %cst_121 {dimension_numbers = #tpu.dot_dimension_numbers<[1], [0], [0], [1], [0, 0, 1, 1], [], []>} : vector<8x8xbf16>, vector<8x32xbf16>, vector<8x32xf32> -> vector<8x32xf32>
      %218 = arith.addf %185, %217 : vector<8x32xf32>
      %c1_i32_122 = arith.constant 1 : i32
      %219 = arith.index_cast %c1_i32_122 : i32 to index
      %220 = arith.index_cast %arg16 : i32 to index
      %c0_123 = arith.constant 0 : index
      %c0_124 = arith.constant 0 : index
      %221 = vector.load %arg13[%219, %220, %c0_123, %c0_124] : memref<4x2x8x8xbf16, #tpu.memory_space<vmem>>, vector<1x1x8x8xbf16>
      %222 = vector.shape_cast %221 : vector<1x1x8x8xbf16> to vector<8x8xbf16>
      %223 = arith.index_cast %c1_i32_122 : i32 to index
      %224 = arith.index_cast %arg16 : i32 to index
      %c0_125 = arith.constant 0 : index
      %c0_126 = arith.constant 0 : index
      %225 = vector.load %arg14[%223, %224, %c0_125, %c0_126] : memref<4x2x8x8xbf16, #tpu.memory_space<vmem>>, vector<1x1x8x8xbf16>
      %226 = vector.shape_cast %225 : vector<1x1x8x8xbf16> to vector<8x8xbf16>
      %227 = arith.index_cast %c1_i32_122 : i32 to index
      %228 = arith.index_cast %arg16 : i32 to index
      %c0_127 = arith.constant 0 : index
      %c0_128 = arith.constant 0 : index
      %229 = vector.load %arg15[%227, %228, %c0_127, %c0_128] : memref<4x2x8x8xbf16, #tpu.memory_space<vmem>>, vector<1x1x8x8xbf16>
      %230 = vector.shape_cast %229 : vector<1x1x8x8xbf16> to vector<8x8xbf16>
      %cst_129 = arith.constant dense<0.000000e+00> : vector<8x8xf32>
      %231 = tpu.matmul %222, %226, %cst_129 {dimension_numbers = #tpu.dot_dimension_numbers<[1], [1], [0], [0], [0, 0, 1, 0], [], []>} : vector<8x8xbf16>, vector<8x8xbf16>, vector<8x8xf32> -> vector<8x8xf32>
      %cst_130 = arith.constant 0.353553385 : f32
      %232 = vector.broadcast %cst_130 : f32 to vector<8x8xf32>
      %233 = arith.mulf %231, %232 : vector<8x8xf32>
      %cst_131 = arith.constant dense<0xFF800000> : vector<8xf32>
      %234 = vector.multi_reduction <maximumf>, %233, %cst_131 [1] : vector<8x8xf32> to vector<8xf32>
      %235 = vector.shape_cast %234 : vector<8xf32> to vector<8x1xf32>
      %236 = vector.broadcast %235 : vector<8x1xf32> to vector<8x8xf32>
      %237 = arith.subf %233, %236 : vector<8x8xf32>
      %238 = math.exp %237 : vector<8x8xf32>
      %cst_132 = arith.constant dense<0.000000e+00> : vector<8xf32>
      %239 = vector.multi_reduction <add>, %238, %cst_132 [1] : vector<8x8xf32> to vector<8xf32>
      %240 = vector.shape_cast %239 : vector<8xf32> to vector<8x1xf32>
      %241 = tpu.reciprocal %240 {approx = true} : vector<8x1xf32> -> vector<8x1xf32>
      %242 = vector.broadcast %241 : vector<8x1xf32> to vector<8x8xf32>
      %243 = arith.mulf %238, %242 : vector<8x8xf32>
      %244 = arith.truncf %243 : vector<8x8xf32> to vector<8x8xbf16>
      %cst_133 = arith.constant dense<0.000000e+00> : vector<8x8xf32>
      %245 = tpu.matmul %244, %230, %cst_133 {dimension_numbers = #tpu.dot_dimension_numbers<[1], [0], [0], [1], [0, 0, 1, 1], [], []>} : vector<8x8xbf16>, vector<8x8xbf16>, vector<8x8xf32> -> vector<8x8xf32>
      %246 = arith.truncf %245 : vector<8x8xf32> to vector<8x8xbf16>
      %247 = arith.index_cast %c1_i32_122 : i32 to index
      %c0_134 = arith.constant 0 : index
      %c0_135 = arith.constant 0 : index
      %248 = vector.load %arg7[%247, %c0_134, %c0_135] : memref<4x8x32xbf16, #tpu.memory_space<vmem>>, vector<1x8x32xbf16>
      %249 = vector.shape_cast %248 : vector<1x8x32xbf16> to vector<8x32xbf16>
      %cst_136 = arith.constant dense<0.000000e+00> : vector<8x32xf32>
      %250 = tpu.matmul %246, %249, %cst_136 {dimension_numbers = #tpu.dot_dimension_numbers<[1], [0], [0], [1], [0, 0, 1, 1], [], []>} : vector<8x8xbf16>, vector<8x32xbf16>, vector<8x32xf32> -> vector<8x32xf32>
      %251 = arith.addf %218, %250 : vector<8x32xf32>
      %c2_i32_137 = arith.constant 2 : i32
      %252 = arith.index_cast %c2_i32_137 : i32 to index
      %253 = arith.index_cast %arg16 : i32 to index
      %c0_138 = arith.constant 0 : index
      %c0_139 = arith.constant 0 : index
      %254 = vector.load %arg13[%252, %253, %c0_138, %c0_139] : memref<4x2x8x8xbf16, #tpu.memory_space<vmem>>, vector<1x1x8x8xbf16>
      %255 = vector.shape_cast %254 : vector<1x1x8x8xbf16> to vector<8x8xbf16>
      %256 = arith.index_cast %c2_i32_137 : i32 to index
      %257 = arith.index_cast %arg16 : i32 to index
      %c0_140 = arith.constant 0 : index
      %c0_141 = arith.constant 0 : index
      %258 = vector.load %arg14[%256, %257, %c0_140, %c0_141] : memref<4x2x8x8xbf16, #tpu.memory_space<vmem>>, vector<1x1x8x8xbf16>
      %259 = vector.shape_cast %258 : vector<1x1x8x8xbf16> to vector<8x8xbf16>
      %260 = arith.index_cast %c2_i32_137 : i32 to index
      %261 = arith.index_cast %arg16 : i32 to index
      %c0_142 = arith.constant 0 : index
      %c0_143 = arith.constant 0 : index
      %262 = vector.load %arg15[%260, %261, %c0_142, %c0_143] : memref<4x2x8x8xbf16, #tpu.memory_space<vmem>>, vector<1x1x8x8xbf16>
      %263 = vector.shape_cast %262 : vector<1x1x8x8xbf16> to vector<8x8xbf16>
      %cst_144 = arith.constant dense<0.000000e+00> : vector<8x8xf32>
      %264 = tpu.matmul %255, %259, %cst_144 {dimension_numbers = #tpu.dot_dimension_numbers<[1], [1], [0], [0], [0, 0, 1, 0], [], []>} : vector<8x8xbf16>, vector<8x8xbf16>, vector<8x8xf32> -> vector<8x8xf32>
      %cst_145 = arith.constant 0.353553385 : f32
      %265 = vector.broadcast %cst_145 : f32 to vector<8x8xf32>
      %266 = arith.mulf %264, %265 : vector<8x8xf32>
      %cst_146 = arith.constant dense<0xFF800000> : vector<8xf32>
      %267 = vector.multi_reduction <maximumf>, %266, %cst_146 [1] : vector<8x8xf32> to vector<8xf32>
      %268 = vector.shape_cast %267 : vector<8xf32> to vector<8x1xf32>
      %269 = vector.broadcast %268 : vector<8x1xf32> to vector<8x8xf32>
      %270 = arith.subf %266, %269 : vector<8x8xf32>
      %271 = math.exp %270 : vector<8x8xf32>
      %cst_147 = arith.constant dense<0.000000e+00> : vector<8xf32>
      %272 = vector.multi_reduction <add>, %271, %cst_147 [1] : vector<8x8xf32> to vector<8xf32>
      %273 = vector.shape_cast %272 : vector<8xf32> to vector<8x1xf32>
      %274 = tpu.reciprocal %273 {approx = true} : vector<8x1xf32> -> vector<8x1xf32>
      %275 = vector.broadcast %274 : vector<8x1xf32> to vector<8x8xf32>
      %276 = arith.mulf %271, %275 : vector<8x8xf32>
      %277 = arith.truncf %276 : vector<8x8xf32> to vector<8x8xbf16>
      %cst_148 = arith.constant dense<0.000000e+00> : vector<8x8xf32>
      %278 = tpu.matmul %277, %263, %cst_148 {dimension_numbers = #tpu.dot_dimension_numbers<[1], [0], [0], [1], [0, 0, 1, 1], [], []>} : vector<8x8xbf16>, vector<8x8xbf16>, vector<8x8xf32> -> vector<8x8xf32>
      %279 = arith.truncf %278 : vector<8x8xf32> to vector<8x8xbf16>
      %280 = arith.index_cast %c2_i32_137 : i32 to index
      %c0_149 = arith.constant 0 : index
      %c0_150 = arith.constant 0 : index
      %281 = vector.load %arg7[%280, %c0_149, %c0_150] : memref<4x8x32xbf16, #tpu.memory_space<vmem>>, vector<1x8x32xbf16>
      %282 = vector.shape_cast %281 : vector<1x8x32xbf16> to vector<8x32xbf16>
      %cst_151 = arith.constant dense<0.000000e+00> : vector<8x32xf32>
      %283 = tpu.matmul %279, %282, %cst_151 {dimension_numbers = #tpu.dot_dimension_numbers<[1], [0], [0], [1], [0, 0, 1, 1], [], []>} : vector<8x8xbf16>, vector<8x32xbf16>, vector<8x32xf32> -> vector<8x32xf32>
      %284 = arith.addf %251, %283 : vector<8x32xf32>
      %c3_i32_152 = arith.constant 3 : i32
      %285 = arith.index_cast %c3_i32_152 : i32 to index
      %286 = arith.index_cast %arg16 : i32 to index
      %c0_153 = arith.constant 0 : index
      %c0_154 = arith.constant 0 : index
      %287 = vector.load %arg13[%285, %286, %c0_153, %c0_154] : memref<4x2x8x8xbf16, #tpu.memory_space<vmem>>, vector<1x1x8x8xbf16>
      %288 = vector.shape_cast %287 : vector<1x1x8x8xbf16> to vector<8x8xbf16>
      %289 = arith.index_cast %c3_i32_152 : i32 to index
      %290 = arith.index_cast %arg16 : i32 to index
      %c0_155 = arith.constant 0 : index
      %c0_156 = arith.constant 0 : index
      %291 = vector.load %arg14[%289, %290, %c0_155, %c0_156] : memref<4x2x8x8xbf16, #tpu.memory_space<vmem>>, vector<1x1x8x8xbf16>
      %292 = vector.shape_cast %291 : vector<1x1x8x8xbf16> to vector<8x8xbf16>
      %293 = arith.index_cast %c3_i32_152 : i32 to index
      %294 = arith.index_cast %arg16 : i32 to index
      %c0_157 = arith.constant 0 : index
      %c0_158 = arith.constant 0 : index
      %295 = vector.load %arg15[%293, %294, %c0_157, %c0_158] : memref<4x2x8x8xbf16, #tpu.memory_space<vmem>>, vector<1x1x8x8xbf16>
      %296 = vector.shape_cast %295 : vector<1x1x8x8xbf16> to vector<8x8xbf16>
      %cst_159 = arith.constant dense<0.000000e+00> : vector<8x8xf32>
      %297 = tpu.matmul %288, %292, %cst_159 {dimension_numbers = #tpu.dot_dimension_numbers<[1], [1], [0], [0], [0, 0, 1, 0], [], []>} : vector<8x8xbf16>, vector<8x8xbf16>, vector<8x8xf32> -> vector<8x8xf32>
      %cst_160 = arith.constant 0.353553385 : f32
      %298 = vector.broadcast %cst_160 : f32 to vector<8x8xf32>
      %299 = arith.mulf %297, %298 : vector<8x8xf32>
      %cst_161 = arith.constant dense<0xFF800000> : vector<8xf32>
      %300 = vector.multi_reduction <maximumf>, %299, %cst_161 [1] : vector<8x8xf32> to vector<8xf32>
      %301 = vector.shape_cast %300 : vector<8xf32> to vector<8x1xf32>
      %302 = vector.broadcast %301 : vector<8x1xf32> to vector<8x8xf32>
      %303 = arith.subf %299, %302 : vector<8x8xf32>
      %304 = math.exp %303 : vector<8x8xf32>
      %cst_162 = arith.constant dense<0.000000e+00> : vector<8xf32>
      %305 = vector.multi_reduction <add>, %304, %cst_162 [1] : vector<8x8xf32> to vector<8xf32>
      %306 = vector.shape_cast %305 : vector<8xf32> to vector<8x1xf32>
      %307 = tpu.reciprocal %306 {approx = true} : vector<8x1xf32> -> vector<8x1xf32>
      %308 = vector.broadcast %307 : vector<8x1xf32> to vector<8x8xf32>
      %309 = arith.mulf %304, %308 : vector<8x8xf32>
      %310 = arith.truncf %309 : vector<8x8xf32> to vector<8x8xbf16>
      %cst_163 = arith.constant dense<0.000000e+00> : vector<8x8xf32>
      %311 = tpu.matmul %310, %296, %cst_163 {dimension_numbers = #tpu.dot_dimension_numbers<[1], [0], [0], [1], [0, 0, 1, 1], [], []>} : vector<8x8xbf16>, vector<8x8xbf16>, vector<8x8xf32> -> vector<8x8xf32>
      %312 = arith.truncf %311 : vector<8x8xf32> to vector<8x8xbf16>
      %313 = arith.index_cast %c3_i32_152 : i32 to index
      %c0_164 = arith.constant 0 : index
      %c0_165 = arith.constant 0 : index
      %314 = vector.load %arg7[%313, %c0_164, %c0_165] : memref<4x8x32xbf16, #tpu.memory_space<vmem>>, vector<1x8x32xbf16>
      %315 = vector.shape_cast %314 : vector<1x8x32xbf16> to vector<8x32xbf16>
      %cst_166 = arith.constant dense<0.000000e+00> : vector<8x32xf32>
      %316 = tpu.matmul %312, %315, %cst_166 {dimension_numbers = #tpu.dot_dimension_numbers<[1], [0], [0], [1], [0, 0, 1, 1], [], []>} : vector<8x8xbf16>, vector<8x32xbf16>, vector<8x32xf32> -> vector<8x32xf32>
      %317 = arith.addf %284, %316 : vector<8x32xf32>
      %c4_i32_167 = arith.constant 4 : i32
      %318 = vector.broadcast %183 : vector<1x32xf32> to vector<8x32xf32>
      %319 = arith.addf %317, %318 : vector<8x32xf32>
      %c8_i32 = arith.constant 8 : i32
      %320 = arith.muli %arg16, %c8_i32 : i32
      %321 = tpu.assume_multiple %320, 8 : i32
      %322 = arith.index_cast %321 : i32 to index
      %c0_168 = arith.constant 0 : index
      %323 = vector.load %arg12[%322, %c0_168] : memref<16x32xf32, #tpu.memory_space<vmem>>, vector<8x32xf32>
      tpu.vector_store %arg12[%322, %c0_168], %319 {strides = array<i32>} : memref<16x32xf32, #tpu.memory_space<vmem>>, vector<8x32xf32>,
    }
    %c2_i32_105 = arith.constant 2 : i32
    return
  }
  func.func @transform_0(%arg0: i32) -> (i32, i32) {
    %c0_i32 = arith.constant 0 : i32
    %c0_i32_0 = arith.constant 0 : i32
    return %arg0, %c0_i32 : i32, i32
  }
  func.func @transform_1(%arg0: i32) -> (i32, i32) {
    %c0_i32 = arith.constant 0 : i32
    %c0_i32_0 = arith.constant 0 : i32
    return %arg0, %c0_i32 : i32, i32
  }
  func.func @transform_2(%arg0: i32) -> (i32, i32) {
    %c0_i32 = arith.constant 0 : i32
    %c0_i32_0 = arith.constant 0 : i32
    return %arg0, %c0_i32 : i32, i32
  }
  func.func @transform_3(%arg0: i32) -> (i32, i32, i32) {
    %c0_i32 = arith.constant 0 : i32
    %c0_i32_0 = arith.constant 0 : i32
    %c0_i32_1 = arith.constant 0 : i32
    %c0_i32_2 = arith.constant 0 : i32
    return %c0_i32, %c0_i32_0, %c0_i32_1 : i32, i32, i32
  }
  func.func @transform_4(%arg0: i32) -> (i32, i32, i32) {
    %c0_i32 = arith.constant 0 : i32
    %c0_i32_0 = arith.constant 0 : i32
    %c0_i32_1 = arith.constant 0 : i32
    %c0_i32_2 = arith.constant 0 : i32
    return %c0_i32, %c0_i32_0, %c0_i32_1 : i32, i32, i32
  }
  func.func @transform_5(%arg0: i32) -> (i32, i32, i32) {
    %c0_i32 = arith.constant 0 : i32
    %c0_i32_0 = arith.constant 0 : i32
    %c0_i32_1 = arith.constant 0 : i32
    %c0_i32_2 = arith.constant 0 : i32
    return %c0_i32, %c0_i32_0, %c0_i32_1 : i32, i32, i32
  }
  func.func @transform_6(%arg0: i32) -> (i32, i32, i32) {
    %c0_i32 = arith.constant 0 : i32
    %c0_i32_0 = arith.constant 0 : i32
    %c0_i32_1 = arith.constant 0 : i32
    %c0_i32_2 = arith.constant 0 : i32
    return %c0_i32, %c0_i32_0, %c0_i32_1 : i32, i32, i32
  }
  func.func @transform_7(%arg0: i32) -> (i32, i32, i32) {
    %c0_i32 = arith.constant 0 : i32
    %c0_i32_0 = arith.constant 0 : i32
    %c0_i32_1 = arith.constant 0 : i32
    %c0_i32_2 = arith.constant 0 : i32
    return %c0_i32, %c0_i32_0, %c0_i32_1 : i32, i32, i32
  }
  func.func @transform_8(%arg0: i32) -> (i32, i32, i32) {
    %c0_i32 = arith.constant 0 : i32
    %c0_i32_0 = arith.constant 0 : i32
    %c0_i32_1 = arith.constant 0 : i32
    %c0_i32_2 = arith.constant 0 : i32
    return %c0_i32, %c0_i32_0, %c0_i32_1 : i32, i32, i32
  }
  func.func @transform_9(%arg0: i32) -> (i32, i32, i32) {
    %c0_i32 = arith.constant 0 : i32
    %c0_i32_0 = arith.constant 0 : i32
    %c0_i32_1 = arith.constant 0 : i32
    %c0_i32_2 = arith.constant 0 : i32
    return %c0_i32, %c0_i32_0, %c0_i32_1 : i32, i32, i32
  }
  func.func @transform_10(%arg0: i32) -> (i32, i32) {
    %c0_i32 = arith.constant 0 : i32
    %c0_i32_0 = arith.constant 0 : i32
    %c0_i32_1 = arith.constant 0 : i32
    return %c0_i32, %c0_i32_0 : i32, i32
  }
  func.func @transform_11(%arg0: i32) -> (i32, i32) {
    %c0_i32 = arith.constant 0 : i32
    %c0_i32_0 = arith.constant 0 : i32
    return %arg0, %c0_i32 : i32, i32
  }
}

module attributes {stable_mosaic.version = 11 : i64} {
  func.func @_mha_kernel(%arg0: i32, %arg1: memref<16x32xbf16, #tpu.memory_space<vmem>>, %arg2: memref<16x32xbf16, #tpu.memory_space<vmem>>, %arg3: memref<16x32xbf16, #tpu.memory_space<vmem>>, %arg4: memref<4x32x8xbf16, #tpu.memory_space<vmem>>, %arg5: memref<4x32x8xbf16, #tpu.memory_space<vmem>>, %arg6: memref<4x32x8xbf16, #tpu.memory_space<vmem>>, %arg7: memref<4x8x32xbf16, #tpu.memory_space<vmem>>, %arg8: memref<4x1x8xf32, #tpu.memory_space<vmem>>, %arg9: memref<4x1x8xf32, #tpu.memory_space<vmem>>, %arg10: memref<4x1x8xf32, #tpu.memory_space<vmem>>, %arg11: memref<1x32xf32, #tpu.memory_space<vmem>>, %arg12: memref<16x32xf32, #tpu.memory_space<vmem>>, %arg13: memref<4x2x8x8xbf16, #tpu.memory_space<vmem>>, %arg14: memref<4x2x8x8xbf16, #tpu.memory_space<vmem>>, %arg15: memref<4x2x8x8xbf16, #tpu.memory_space<vmem>>) attributes {dimension_semantics = [#tpu.dimension_semantics<parallel>], iteration_bounds = array<i64: 1>, scalar_prefetch = 0 : i64, scratch_operands = 3 : i64, tpu.core_type = #tpu.core_type<tc>, window_params = [{transform_indices = @transform_0, window_bounds = array<i64: 16, 32>}, {transform_indices = @transform_1, window_bounds = array<i64: 16, 32>}, {transform_indices = @transform_2, window_bounds = array<i64: 16, 32>}, {pipeline_mode = #tpu.pipeline_mode<synchronous>, transform_indices = @transform_3, window_bounds = array<i64: 4, 32, 8>}, {pipeline_mode = #tpu.pipeline_mode<synchronous>, transform_indices = @transform_4, window_bounds = array<i64: 4, 32, 8>}, {pipeline_mode = #tpu.pipeline_mode<synchronous>, transform_indices = @transform_5, window_bounds = array<i64: 4, 32, 8>}, {pipeline_mode = #tpu.pipeline_mode<synchronous>, transform_indices = @transform_6, window_bounds = array<i64: 4, 8, 32>}, {pipeline_mode = #tpu.pipeline_mode<synchronous>, transform_indices = @transform_7, window_bounds = array<i64: 4, 1, 8>}, {pipeline_mode = #tpu.pipeline_mode<synchronous>, transform_indices = @transform_8, window_bounds = array<i64: 4, 1, 8>}, {pipeline_mode = #tpu.pipeline_mode<synchronous>, transform_indices = @transform_9, window_bounds = array<i64: 4, 1, 8>}, {pipeline_mode = #tpu.pipeline_mode<synchronous>, transform_indices = @transform_10, window_bounds = array<i64: 1, 32>}, {transform_indices = @transform_11, window_bounds = array<i64: 16, 32>}]} {
    %c0 = arith.constant 0 : index
    %c0_0 = arith.constant 0 : index
    %0 = vector.load %arg1[%c0, %c0_0] : memref<16x32xbf16, #tpu.memory_space<vmem>>, vector<16x32xbf16>
    %c0_1 = arith.constant 0 : index
    %c0_2 = arith.constant 0 : index
    %1 = vector.load %arg2[%c0_1, %c0_2] : memref<16x32xbf16, #tpu.memory_space<vmem>>, vector<16x32xbf16>
    %c0_3 = arith.constant 0 : index
    %c0_4 = arith.constant 0 : index
    %2 = vector.load %arg3[%c0_3, %c0_4] : memref<16x32xbf16, #tpu.memory_space<vmem>>, vector<16x32xbf16>
    %c0_i32 = arith.constant 0 : i32
    %3 = arith.index_cast %c0_i32 : i32 to index
    %c0_5 = arith.constant 0 : index
    %c0_6 = arith.constant 0 : index
    %4 = vector.load %arg4[%3, %c0_5, %c0_6] : memref<4x32x8xbf16, #tpu.memory_space<vmem>>, vector<1x32x8xbf16>
    %5 = vector.shape_cast %4 : vector<1x32x8xbf16> to vector<32x8xbf16>
    %cst = arith.constant dense<0.000000e+00> : vector<16x8xf32>
    %6 = tpu.matmul %0, %5, %cst {dimension_numbers = #tpu.dot_dimension_numbers<[1], [0], [0], [1], [0, 0, 1, 1], [], []>} : vector<16x32xbf16>, vector<32x8xbf16>, vector<16x8xf32> -> vector<16x8xf32>
    %7 = arith.index_cast %c0_i32 : i32 to index
    %c0_7 = arith.constant 0 : index
    %c0_8 = arith.constant 0 : index
    %8 = vector.load %arg8[%7, %c0_7, %c0_8] : memref<4x1x8xf32, #tpu.memory_space<vmem>>, vector<1x1x8xf32>
    %9 = vector.shape_cast %8 : vector<1x1x8xf32> to vector<1x8xf32>
    %10 = vector.broadcast %9 : vector<1x8xf32> to vector<16x8xf32>
    %11 = arith.addf %6, %10 : vector<16x8xf32>
    %12 = arith.index_cast %c0_i32 : i32 to index
    %c0_9 = arith.constant 0 : index
    %c0_10 = arith.constant 0 : index
    %13 = vector.load %arg5[%12, %c0_9, %c0_10] : memref<4x32x8xbf16, #tpu.memory_space<vmem>>, vector<1x32x8xbf16>
    %14 = vector.shape_cast %13 : vector<1x32x8xbf16> to vector<32x8xbf16>
    %cst_11 = arith.constant dense<0.000000e+00> : vector<16x8xf32>
    %15 = tpu.matmul %1, %14, %cst_11 {dimension_numbers = #tpu.dot_dimension_numbers<[1], [0], [0], [1], [0, 0, 1, 1], [], []>} : vector<16x32xbf16>, vector<32x8xbf16>, vector<16x8xf32> -> vector<16x8xf32>
    %16 = arith.index_cast %c0_i32 : i32 to index
    %c0_12 = arith.constant 0 : index
    %c0_13 = arith.constant 0 : index
    %17 = vector.load %arg9[%16, %c0_12, %c0_13] : memref<4x1x8xf32, #tpu.memory_space<vmem>>, vector<1x1x8xf32>
    %18 = vector.shape_cast %17 : vector<1x1x8xf32> to vector<1x8xf32>
    %19 = vector.broadcast %18 : vector<1x8xf32> to vector<16x8xf32>
    %20 = arith.addf %15, %19 : vector<16x8xf32>
    %21 = arith.index_cast %c0_i32 : i32 to index
    %c0_14 = arith.constant 0 : index
    %c0_15 = arith.constant 0 : index
    %22 = vector.load %arg6[%21, %c0_14, %c0_15] : memref<4x32x8xbf16, #tpu.memory_space<vmem>>, vector<1x32x8xbf16>
    %23 = vector.shape_cast %22 : vector<1x32x8xbf16> to vector<32x8xbf16>
    %cst_16 = arith.constant dense<0.000000e+00> : vector<16x8xf32>
    %24 = tpu.matmul %2, %23, %cst_16 {dimension_numbers = #tpu.dot_dimension_numbers<[1], [0], [0], [1], [0, 0, 1, 1], [], []>} : vector<16x32xbf16>, vector<32x8xbf16>, vector<16x8xf32> -> vector<16x8xf32>
    %25 = arith.index_cast %c0_i32 : i32 to index
    %c0_17 = arith.constant 0 : index
    %c0_18 = arith.constant 0 : index
    %26 = vector.load %arg10[%25, %c0_17, %c0_18] : memref<4x1x8xf32, #tpu.memory_space<vmem>>, vector<1x1x8xf32>
    %27 = vector.shape_cast %26 : vector<1x1x8xf32> to vector<1x8xf32>
    %28 = vector.broadcast %27 : vector<1x8xf32> to vector<16x8xf32>
    %29 = arith.addf %24, %28 : vector<16x8xf32>
    %30 = vector.shape_cast %11 : vector<16x8xf32> to vector<2x8x8xf32>
    %31 = arith.truncf %30 : vector<2x8x8xf32> to vector<2x8x8xbf16>
    %32 = arith.index_cast %c0_i32 : i32 to index
    %c0_19 = arith.constant 0 : index
    %c0_20 = arith.constant 0 : index
    %c0_21 = arith.constant 0 : index
    %33 = vector.load %arg13[%32, %c0_19, %c0_20, %c0_21] : memref<4x2x8x8xbf16, #tpu.memory_space<vmem>>, vector<1x2x8x8xbf16>
    %34 = vector.shape_cast %33 : vector<1x2x8x8xbf16> to vector<2x8x8xbf16>
    %35 = vector.shape_cast %31 : vector<2x8x8xbf16> to vector<1x2x8x8xbf16>
    tpu.vector_store %arg13[%32, %c0_19, %c0_20, %c0_21], %35 {strides = array<i32>} : memref<4x2x8x8xbf16, #tpu.memory_space<vmem>>, vector<1x2x8x8xbf16>,
    %36 = vector.shape_cast %20 : vector<16x8xf32> to vector<2x8x8xf32>
    %37 = arith.truncf %36 : vector<2x8x8xf32> to vector<2x8x8xbf16>
    %38 = arith.index_cast %c0_i32 : i32 to index
    %c0_22 = arith.constant 0 : index
    %c0_23 = arith.constant 0 : index
    %c0_24 = arith.constant 0 : index
    %39 = vector.load %arg14[%38, %c0_22, %c0_23, %c0_24] : memref<4x2x8x8xbf16, #tpu.memory_space<vmem>>, vector<1x2x8x8xbf16>
    %40 = vector.shape_cast %39 : vector<1x2x8x8xbf16> to vector<2x8x8xbf16>
    %41 = vector.shape_cast %37 : vector<2x8x8xbf16> to vector<1x2x8x8xbf16>
    tpu.vector_store %arg14[%38, %c0_22, %c0_23, %c0_24], %41 {strides = array<i32>} : memref<4x2x8x8xbf16, #tpu.memory_space<vmem>>, vector<1x2x8x8xbf16>,
    %42 = vector.shape_cast %29 : vector<16x8xf32> to vector<2x8x8xf32>
    %43 = arith.truncf %42 : vector<2x8x8xf32> to vector<2x8x8xbf16>
    %44 = arith.index_cast %c0_i32 : i32 to index
    %c0_25 = arith.constant 0 : index
    %c0_26 = arith.constant 0 : index
    %c0_27 = arith.constant 0 : index
    %45 = vector.load %arg15[%44, %c0_25, %c0_26, %c0_27] : memref<4x2x8x8xbf16, #tpu.memory_space<vmem>>, vector<1x2x8x8xbf16>
    %46 = vector.shape_cast %45 : vector<1x2x8x8xbf16> to vector<2x8x8xbf16>
    %47 = vector.shape_cast %43 : vector<2x8x8xbf16> to vector<1x2x8x8xbf16>
    tpu.vector_store %arg15[%44, %c0_25, %c0_26, %c0_27], %47 {strides = array<i32>} : memref<4x2x8x8xbf16, #tpu.memory_space<vmem>>, vector<1x2x8x8xbf16>,
    %c1_i32 = arith.constant 1 : i32
    %48 = arith.index_cast %c1_i32 : i32 to index
    %c0_28 = arith.constant 0 : index
    %c0_29 = arith.constant 0 : index
    %49 = vector.load %arg4[%48, %c0_28, %c0_29] : memref<4x32x8xbf16, #tpu.memory_space<vmem>>, vector<1x32x8xbf16>
    %50 = vector.shape_cast %49 : vector<1x32x8xbf16> to vector<32x8xbf16>
    %cst_30 = arith.constant dense<0.000000e+00> : vector<16x8xf32>
    %51 = tpu.matmul %0, %50, %cst_30 {dimension_numbers = #tpu.dot_dimension_numbers<[1], [0], [0], [1], [0, 0, 1, 1], [], []>} : vector<16x32xbf16>, vector<32x8xbf16>, vector<16x8xf32> -> vector<16x8xf32>
    %52 = arith.index_cast %c1_i32 : i32 to index
    %c0_31 = arith.constant 0 : index
    %c0_32 = arith.constant 0 : index
    %53 = vector.load %arg8[%52, %c0_31, %c0_32] : memref<4x1x8xf32, #tpu.memory_space<vmem>>, vector<1x1x8xf32>
    %54 = vector.shape_cast %53 : vector<1x1x8xf32> to vector<1x8xf32>
    %55 = vector.broadcast %54 : vector<1x8xf32> to vector<16x8xf32>
    %56 = arith.addf %51, %55 : vector<16x8xf32>
    %57 = arith.index_cast %c1_i32 : i32 to index
    %c0_33 = arith.constant 0 : index
    %c0_34 = arith.constant 0 : index
    %58 = vector.load %arg5[%57, %c0_33, %c0_34] : memref<4x32x8xbf16, #tpu.memory_space<vmem>>, vector<1x32x8xbf16>
    %59 = vector.shape_cast %58 : vector<1x32x8xbf16> to vector<32x8xbf16>
    %cst_35 = arith.constant dense<0.000000e+00> : vector<16x8xf32>
    %60 = tpu.matmul %1, %59, %cst_35 {dimension_numbers = #tpu.dot_dimension_numbers<[1], [0], [0], [1], [0, 0, 1, 1], [], []>} : vector<16x32xbf16>, vector<32x8xbf16>, vector<16x8xf32> -> vector<16x8xf32>
    %61 = arith.index_cast %c1_i32 : i32 to index
    %c0_36 = arith.constant 0 : index
    %c0_37 = arith.constant 0 : index
    %62 = vector.load %arg9[%61, %c0_36, %c0_37] : memref<4x1x8xf32, #tpu.memory_space<vmem>>, vector<1x1x8xf32>
    %63 = vector.shape_cast %62 : vector<1x1x8xf32> to vector<1x8xf32>
    %64 = vector.broadcast %63 : vector<1x8xf32> to vector<16x8xf32>
    %65 = arith.addf %60, %64 : vector<16x8xf32>
    %66 = arith.index_cast %c1_i32 : i32 to index
    %c0_38 = arith.constant 0 : index
    %c0_39 = arith.constant 0 : index
    %67 = vector.load %arg6[%66, %c0_38, %c0_39] : memref<4x32x8xbf16, #tpu.memory_space<vmem>>, vector<1x32x8xbf16>
    %68 = vector.shape_cast %67 : vector<1x32x8xbf16> to vector<32x8xbf16>
    %cst_40 = arith.constant dense<0.000000e+00> : vector<16x8xf32>
    %69 = tpu.matmul %2, %68, %cst_40 {dimension_numbers = #tpu.dot_dimension_numbers<[1], [0], [0], [1], [0, 0, 1, 1], [], []>} : vector<16x32xbf16>, vector<32x8xbf16>, vector<16x8xf32> -> vector<16x8xf32>
    %70 = arith.index_cast %c1_i32 : i32 to index
    %c0_41 = arith.constant 0 : index
    %c0_42 = arith.constant 0 : index
    %71 = vector.load %arg10[%70, %c0_41, %c0_42] : memref<4x1x8xf32, #tpu.memory_space<vmem>>, vector<1x1x8xf32>
    %72 = vector.shape_cast %71 : vector<1x1x8xf32> to vector<1x8xf32>
    %73 = vector.broadcast %72 : vector<1x8xf32> to vector<16x8xf32>
    %74 = arith.addf %69, %73 : vector<16x8xf32>
    %75 = vector.shape_cast %56 : vector<16x8xf32> to vector<2x8x8xf32>
    %76 = arith.truncf %75 : vector<2x8x8xf32> to vector<2x8x8xbf16>
    %77 = arith.index_cast %c1_i32 : i32 to index
    %c0_43 = arith.constant 0 : index
    %c0_44 = arith.constant 0 : index
    %c0_45 = arith.constant 0 : index
    %78 = vector.load %arg13[%77, %c0_43, %c0_44, %c0_45] : memref<4x2x8x8xbf16, #tpu.memory_space<vmem>>, vector<1x2x8x8xbf16>
    %79 = vector.shape_cast %78 : vector<1x2x8x8xbf16> to vector<2x8x8xbf16>
    %80 = vector.shape_cast %76 : vector<2x8x8xbf16> to vector<1x2x8x8xbf16>
    tpu.vector_store %arg13[%77, %c0_43, %c0_44, %c0_45], %80 {strides = array<i32>} : memref<4x2x8x8xbf16, #tpu.memory_space<vmem>>, vector<1x2x8x8xbf16>,
    %81 = vector.shape_cast %65 : vector<16x8xf32> to vector<2x8x8xf32>
    %82 = arith.truncf %81 : vector<2x8x8xf32> to vector<2x8x8xbf16>
    %83 = arith.index_cast %c1_i32 : i32 to index
    %c0_46 = arith.constant 0 : index
    %c0_47 = arith.constant 0 : index
    %c0_48 = arith.constant 0 : index
    %84 = vector.load %arg14[%83, %c0_46, %c0_47, %c0_48] : memref<4x2x8x8xbf16, #tpu.memory_space<vmem>>, vector<1x2x8x8xbf16>
    %85 = vector.shape_cast %84 : vector<1x2x8x8xbf16> to vector<2x8x8xbf16>
    %86 = vector.shape_cast %82 : vector<2x8x8xbf16> to vector<1x2x8x8xbf16>
    tpu.vector_store %arg14[%83, %c0_46, %c0_47, %c0_48], %86 {strides = array<i32>} : memref<4x2x8x8xbf16, #tpu.memory_space<vmem>>, vector<1x2x8x8xbf16>,
    %87 = vector.shape_cast %74 : vector<16x8xf32> to vector<2x8x8xf32>
    %88 = arith.truncf %87 : vector<2x8x8xf32> to vector<2x8x8xbf16>
    %89 = arith.index_cast %c1_i32 : i32 to index
    %c0_49 = arith.constant 0 : index
    %c0_50 = arith.constant 0 : index
    %c0_51 = arith.constant 0 : index
    %90 = vector.load %arg15[%89, %c0_49, %c0_50, %c0_51] : memref<4x2x8x8xbf16, #tpu.memory_space<vmem>>, vector<1x2x8x8xbf16>
    %91 = vector.shape_cast %90 : vector<1x2x8x8xbf16> to vector<2x8x8xbf16>
    %92 = vector.shape_cast %88 : vector<2x8x8xbf16> to vector<1x2x8x8xbf16>
    tpu.vector_store %arg15[%89, %c0_49, %c0_50, %c0_51], %92 {strides = array<i32>} : memref<4x2x8x8xbf16, #tpu.memory_space<vmem>>, vector<1x2x8x8xbf16>,
    %c2_i32 = arith.constant 2 : i32
    %93 = arith.index_cast %c2_i32 : i32 to index
    %c0_52 = arith.constant 0 : index
    %c0_53 = arith.constant 0 : index
    %94 = vector.load %arg4[%93, %c0_52, %c0_53] : memref<4x32x8xbf16, #tpu.memory_space<vmem>>, vector<1x32x8xbf16>
    %95 = vector.shape_cast %94 : vector<1x32x8xbf16> to vector<32x8xbf16>
    %cst_54 = arith.constant dense<0.000000e+00> : vector<16x8xf32>
    %96 = tpu.matmul %0, %95, %cst_54 {dimension_numbers = #tpu.dot_dimension_numbers<[1], [0], [0], [1], [0, 0, 1, 1], [], []>} : vector<16x32xbf16>, vector<32x8xbf16>, vector<16x8xf32> -> vector<16x8xf32>
    %97 = arith.index_cast %c2_i32 : i32 to index
    %c0_55 = arith.constant 0 : index
    %c0_56 = arith.constant 0 : index
    %98 = vector.load %arg8[%97, %c0_55, %c0_56] : memref<4x1x8xf32, #tpu.memory_space<vmem>>, vector<1x1x8xf32>
    %99 = vector.shape_cast %98 : vector<1x1x8xf32> to vector<1x8xf32>
    %100 = vector.broadcast %99 : vector<1x8xf32> to vector<16x8xf32>
    %101 = arith.addf %96, %100 : vector<16x8xf32>
    %102 = arith.index_cast %c2_i32 : i32 to index
    %c0_57 = arith.constant 0 : index
    %c0_58 = arith.constant 0 : index
    %103 = vector.load %arg5[%102, %c0_57, %c0_58] : memref<4x32x8xbf16, #tpu.memory_space<vmem>>, vector<1x32x8xbf16>
    %104 = vector.shape_cast %103 : vector<1x32x8xbf16> to vector<32x8xbf16>
    %cst_59 = arith.constant dense<0.000000e+00> : vector<16x8xf32>
    %105 = tpu.matmul %1, %104, %cst_59 {dimension_numbers = #tpu.dot_dimension_numbers<[1], [0], [0], [1], [0, 0, 1, 1], [], []>} : vector<16x32xbf16>, vector<32x8xbf16>, vector<16x8xf32> -> vector<16x8xf32>
    %106 = arith.index_cast %c2_i32 : i32 to index
    %c0_60 = arith.constant 0 : index
    %c0_61 = arith.constant 0 : index
    %107 = vector.load %arg9[%106, %c0_60, %c0_61] : memref<4x1x8xf32, #tpu.memory_space<vmem>>, vector<1x1x8xf32>
    %108 = vector.shape_cast %107 : vector<1x1x8xf32> to vector<1x8xf32>
    %109 = vector.broadcast %108 : vector<1x8xf32> to vector<16x8xf32>
    %110 = arith.addf %105, %109 : vector<16x8xf32>
    %111 = arith.index_cast %c2_i32 : i32 to index
    %c0_62 = arith.constant 0 : index
    %c0_63 = arith.constant 0 : index
    %112 = vector.load %arg6[%111, %c0_62, %c0_63] : memref<4x32x8xbf16, #tpu.memory_space<vmem>>, vector<1x32x8xbf16>
    %113 = vector.shape_cast %112 : vector<1x32x8xbf16> to vector<32x8xbf16>
    %cst_64 = arith.constant dense<0.000000e+00> : vector<16x8xf32>
    %114 = tpu.matmul %2, %113, %cst_64 {dimension_numbers = #tpu.dot_dimension_numbers<[1], [0], [0], [1], [0, 0, 1, 1], [], []>} : vector<16x32xbf16>, vector<32x8xbf16>, vector<16x8xf32> -> vector<16x8xf32>
    %115 = arith.index_cast %c2_i32 : i32 to index
    %c0_65 = arith.constant 0 : index
    %c0_66 = arith.constant 0 : index
    %116 = vector.load %arg10[%115, %c0_65, %c0_66] : memref<4x1x8xf32, #tpu.memory_space<vmem>>, vector<1x1x8xf32>
    %117 = vector.shape_cast %116 : vector<1x1x8xf32> to vector<1x8xf32>
    %118 = vector.broadcast %117 : vector<1x8xf32> to vector<16x8xf32>
    %119 = arith.addf %114, %118 : vector<16x8xf32>
    %120 = vector.shape_cast %101 : vector<16x8xf32> to vector<2x8x8xf32>
    %121 = arith.truncf %120 : vector<2x8x8xf32> to vector<2x8x8xbf16>
    %122 = arith.index_cast %c2_i32 : i32 to index
    %c0_67 = arith.constant 0 : index
    %c0_68 = arith.constant 0 : index
    %c0_69 = arith.constant 0 : index
    %123 = vector.load %arg13[%122, %c0_67, %c0_68, %c0_69] : memref<4x2x8x8xbf16, #tpu.memory_space<vmem>>, vector<1x2x8x8xbf16>
    %124 = vector.shape_cast %123 : vector<1x2x8x8xbf16> to vector<2x8x8xbf16>
    %125 = vector.shape_cast %121 : vector<2x8x8xbf16> to vector<1x2x8x8xbf16>
    tpu.vector_store %arg13[%122, %c0_67, %c0_68, %c0_69], %125 {strides = array<i32>} : memref<4x2x8x8xbf16, #tpu.memory_space<vmem>>, vector<1x2x8x8xbf16>,
    %126 = vector.shape_cast %110 : vector<16x8xf32> to vector<2x8x8xf32>
    %127 = arith.truncf %126 : vector<2x8x8xf32> to vector<2x8x8xbf16>
    %128 = arith.index_cast %c2_i32 : i32 to index
    %c0_70 = arith.constant 0 : index
    %c0_71 = arith.constant 0 : index
    %c0_72 = arith.constant 0 : index
    %129 = vector.load %arg14[%128, %c0_70, %c0_71, %c0_72] : memref<4x2x8x8xbf16, #tpu.memory_space<vmem>>, vector<1x2x8x8xbf16>
    %130 = vector.shape_cast %129 : vector<1x2x8x8xbf16> to vector<2x8x8xbf16>
    %131 = vector.shape_cast %127 : vector<2x8x8xbf16> to vector<1x2x8x8xbf16>
    tpu.vector_store %arg14[%128, %c0_70, %c0_71, %c0_72], %131 {strides = array<i32>} : memref<4x2x8x8xbf16, #tpu.memory_space<vmem>>, vector<1x2x8x8xbf16>,
    %132 = vector.shape_cast %119 : vector<16x8xf32> to vector<2x8x8xf32>
    %133 = arith.truncf %132 : vector<2x8x8xf32> to vector<2x8x8xbf16>
    %134 = arith.index_cast %c2_i32 : i32 to index
    %c0_73 = arith.constant 0 : index
    %c0_74 = arith.constant 0 : index
    %c0_75 = arith.constant 0 : index
    %135 = vector.load %arg15[%134, %c0_73, %c0_74, %c0_75] : memref<4x2x8x8xbf16, #tpu.memory_space<vmem>>, vector<1x2x8x8xbf16>
    %136 = vector.shape_cast %135 : vector<1x2x8x8xbf16> to vector<2x8x8xbf16>
    %137 = vector.shape_cast %133 : vector<2x8x8xbf16> to vector<1x2x8x8xbf16>
    tpu.vector_store %arg15[%134, %c0_73, %c0_74, %c0_75], %137 {strides = array<i32>} : memref<4x2x8x8xbf16, #tpu.memory_space<vmem>>, vector<1x2x8x8xbf16>,
    %c3_i32 = arith.constant 3 : i32
    %138 = arith.index_cast %c3_i32 : i32 to index
    %c0_76 = arith.constant 0 : index
    %c0_77 = arith.constant 0 : index
    %139 = vector.load %arg4[%138, %c0_76, %c0_77] : memref<4x32x8xbf16, #tpu.memory_space<vmem>>, vector<1x32x8xbf16>
    %140 = vector.shape_cast %139 : vector<1x32x8xbf16> to vector<32x8xbf16>
    %cst_78 = arith.constant dense<0.000000e+00> : vector<16x8xf32>
    %141 = tpu.matmul %0, %140, %cst_78 {dimension_numbers = #tpu.dot_dimension_numbers<[1], [0], [0], [1], [0, 0, 1, 1], [], []>} : vector<16x32xbf16>, vector<32x8xbf16>, vector<16x8xf32> -> vector<16x8xf32>
    %142 = arith.index_cast %c3_i32 : i32 to index
    %c0_79 = arith.constant 0 : index
    %c0_80 = arith.constant 0 : index
    %143 = vector.load %arg8[%142, %c0_79, %c0_80] : memref<4x1x8xf32, #tpu.memory_space<vmem>>, vector<1x1x8xf32>
    %144 = vector.shape_cast %143 : vector<1x1x8xf32> to vector<1x8xf32>
    %145 = vector.broadcast %144 : vector<1x8xf32> to vector<16x8xf32>
    %146 = arith.addf %141, %145 : vector<16x8xf32>
    %147 = arith.index_cast %c3_i32 : i32 to index
    %c0_81 = arith.constant 0 : index
    %c0_82 = arith.constant 0 : index
    %148 = vector.load %arg5[%147, %c0_81, %c0_82] : memref<4x32x8xbf16, #tpu.memory_space<vmem>>, vector<1x32x8xbf16>
    %149 = vector.shape_cast %148 : vector<1x32x8xbf16> to vector<32x8xbf16>
    %cst_83 = arith.constant dense<0.000000e+00> : vector<16x8xf32>
    %150 = tpu.matmul %1, %149, %cst_83 {dimension_numbers = #tpu.dot_dimension_numbers<[1], [0], [0], [1], [0, 0, 1, 1], [], []>} : vector<16x32xbf16>, vector<32x8xbf16>, vector<16x8xf32> -> vector<16x8xf32>
    %151 = arith.index_cast %c3_i32 : i32 to index
    %c0_84 = arith.constant 0 : index
    %c0_85 = arith.constant 0 : index
    %152 = vector.load %arg9[%151, %c0_84, %c0_85] : memref<4x1x8xf32, #tpu.memory_space<vmem>>, vector<1x1x8xf32>
    %153 = vector.shape_cast %152 : vector<1x1x8xf32> to vector<1x8xf32>
    %154 = vector.broadcast %153 : vector<1x8xf32> to vector<16x8xf32>
    %155 = arith.addf %150, %154 : vector<16x8xf32>
    %156 = arith.index_cast %c3_i32 : i32 to index
    %c0_86 = arith.constant 0 : index
    %c0_87 = arith.constant 0 : index
    %157 = vector.load %arg6[%156, %c0_86, %c0_87] : memref<4x32x8xbf16, #tpu.memory_space<vmem>>, vector<1x32x8xbf16>
    %158 = vector.shape_cast %157 : vector<1x32x8xbf16> to vector<32x8xbf16>
    %cst_88 = arith.constant dense<0.000000e+00> : vector<16x8xf32>
    %159 = tpu.matmul %2, %158, %cst_88 {dimension_numbers = #tpu.dot_dimension_numbers<[1], [0], [0], [1], [0, 0, 1, 1], [], []>} : vector<16x32xbf16>, vector<32x8xbf16>, vector<16x8xf32> -> vector<16x8xf32>
    %160 = arith.index_cast %c3_i32 : i32 to index
    %c0_89 = arith.constant 0 : index
    %c0_90 = arith.constant 0 : index
    %161 = vector.load %arg10[%160, %c0_89, %c0_90] : memref<4x1x8xf32, #tpu.memory_space<vmem>>, vector<1x1x8xf32>
    %162 = vector.shape_cast %161 : vector<1x1x8xf32> to vector<1x8xf32>
    %163 = vector.broadcast %162 : vector<1x8xf32> to vector<16x8xf32>
    %164 = arith.addf %159, %163 : vector<16x8xf32>
    %165 = vector.shape_cast %146 : vector<16x8xf32> to vector<2x8x8xf32>
    %166 = arith.truncf %165 : vector<2x8x8xf32> to vector<2x8x8xbf16>
    %167 = arith.index_cast %c3_i32 : i32 to index
    %c0_91 = arith.constant 0 : index
    %c0_92 = arith.constant 0 : index
    %c0_93 = arith.constant 0 : index
    %168 = vector.load %arg13[%167, %c0_91, %c0_92, %c0_93] : memref<4x2x8x8xbf16, #tpu.memory_space<vmem>>, vector<1x2x8x8xbf16>
    %169 = vector.shape_cast %168 : vector<1x2x8x8xbf16> to vector<2x8x8xbf16>
    %170 = vector.shape_cast %166 : vector<2x8x8xbf16> to vector<1x2x8x8xbf16>
    tpu.vector_store %arg13[%167, %c0_91, %c0_92, %c0_93], %170 {strides = array<i32>} : memref<4x2x8x8xbf16, #tpu.memory_space<vmem>>, vector<1x2x8x8xbf16>,
    %171 = vector.shape_cast %155 : vector<16x8xf32> to vector<2x8x8xf32>
    %172 = arith.truncf %171 : vector<2x8x8xf32> to vector<2x8x8xbf16>
    %173 = arith.index_cast %c3_i32 : i32 to index
    %c0_94 = arith.constant 0 : index
    %c0_95 = arith.constant 0 : index
    %c0_96 = arith.constant 0 : index
    %174 = vector.load %arg14[%173, %c0_94, %c0_95, %c0_96] : memref<4x2x8x8xbf16, #tpu.memory_space<vmem>>, vector<1x2x8x8xbf16>
    %175 = vector.shape_cast %174 : vector<1x2x8x8xbf16> to vector<2x8x8xbf16>
    %176 = vector.shape_cast %172 : vector<2x8x8xbf16> to vector<1x2x8x8xbf16>
    tpu.vector_store %arg14[%173, %c0_94, %c0_95, %c0_96], %176 {strides = array<i32>} : memref<4x2x8x8xbf16, #tpu.memory_space<vmem>>, vector<1x2x8x8xbf16>,
    %177 = vector.shape_cast %164 : vector<16x8xf32> to vector<2x8x8xf32>
    %178 = arith.truncf %177 : vector<2x8x8xf32> to vector<2x8x8xbf16>
    %179 = arith.index_cast %c3_i32 : i32 to index
    %c0_97 = arith.constant 0 : index
    %c0_98 = arith.constant 0 : index
    %c0_99 = arith.constant 0 : index
    %180 = vector.load %arg15[%179, %c0_97, %c0_98, %c0_99] : memref<4x2x8x8xbf16, #tpu.memory_space<vmem>>, vector<1x2x8x8xbf16>
    %181 = vector.shape_cast %180 : vector<1x2x8x8xbf16> to vector<2x8x8xbf16>
    %182 = vector.shape_cast %178 : vector<2x8x8xbf16> to vector<1x2x8x8xbf16>
    tpu.vector_store %arg15[%179, %c0_97, %c0_98, %c0_99], %182 {strides = array<i32>} : memref<4x2x8x8xbf16, #tpu.memory_space<vmem>>, vector<1x2x8x8xbf16>,
    %c4_i32 = arith.constant 4 : i32
    %c0_100 = arith.constant 0 : index
    %c0_101 = arith.constant 0 : index
    %183 = vector.load %arg11[%c0_100, %c0_101] : memref<1x32xf32, #tpu.memory_space<vmem>>, vector<1x32xf32>
    %c0_i32_102 = arith.constant 0 : i32
    %c2_i32_103 = arith.constant 2 : i32
    %184 = arith.addi %c0_i32_102, %c2_i32_103 : i32
    %c1_i32_104 = arith.constant 1 : i32
    scf.for %arg16 = %c0_i32_102 to %184 step %c1_i32_104  : i32 {
      %cst_106 = arith.constant 0.000000e+00 : f32
      %185 = vector.broadcast %cst_106 : f32 to vector<8x32xf32>
      %c0_i32_107 = arith.constant 0 : i32
      %186 = arith.index_cast %c0_i32_107 : i32 to index
      %187 = arith.index_cast %arg16 : i32 to index
      %c0_108 = arith.constant 0 : index
      %c0_109 = arith.constant 0 : index
      %188 = vector.load %arg13[%186, %187, %c0_108, %c0_109] : memref<4x2x8x8xbf16, #tpu.memory_space<vmem>>, vector<1x1x8x8xbf16>
      %189 = vector.shape_cast %188 : vector<1x1x8x8xbf16> to vector<8x8xbf16>
      %190 = arith.index_cast %c0_i32_107 : i32 to index
      %191 = arith.index_cast %arg16 : i32 to index
      %c0_110 = arith.constant 0 : index
      %c0_111 = arith.constant 0 : index
      %192 = vector.load %arg14[%190, %191, %c0_110, %c0_111] : memref<4x2x8x8xbf16, #tpu.memory_space<vmem>>, vector<1x1x8x8xbf16>
      %193 = vector.shape_cast %192 : vector<1x1x8x8xbf16> to vector<8x8xbf16>
      %194 = arith.index_cast %c0_i32_107 : i32 to index
      %195 = arith.index_cast %arg16 : i32 to index
      %c0_112 = arith.constant 0 : index
      %c0_113 = arith.constant 0 : index
      %196 = vector.load %arg15[%194, %195, %c0_112, %c0_113] : memref<4x2x8x8xbf16, #tpu.memory_space<vmem>>, vector<1x1x8x8xbf16>
      %197 = vector.shape_cast %196 : vector<1x1x8x8xbf16> to vector<8x8xbf16>
      %cst_114 = arith.constant dense<0.000000e+00> : vector<8x8xf32>
      %198 = tpu.matmul %189, %193, %cst_114 {dimension_numbers = #tpu.dot_dimension_numbers<[1], [1], [0], [0], [0, 0, 1, 0], [], []>} : vector<8x8xbf16>, vector<8x8xbf16>, vector<8x8xf32> -> vector<8x8xf32>
      %cst_115 = arith.constant 0.353553385 : f32
      %199 = vector.broadcast %cst_115 : f32 to vector<8x8xf32>
      %200 = arith.mulf %198, %199 : vector<8x8xf32>
      %cst_116 = arith.constant dense<0xFF800000> : vector<8xf32>
      %201 = vector.multi_reduction <maximumf>, %200, %cst_116 [1] : vector<8x8xf32> to vector<8xf32>
      %202 = vector.shape_cast %201 : vector<8xf32> to vector<8x1xf32>
      %203 = vector.broadcast %202 : vector<8x1xf32> to vector<8x8xf32>
      %204 = arith.subf %200, %203 : vector<8x8xf32>
      %205 = math.exp %204 : vector<8x8xf32>
      %cst_117 = arith.constant dense<0.000000e+00> : vector<8xf32>
      %206 = vector.multi_reduction <add>, %205, %cst_117 [1] : vector<8x8xf32> to vector<8xf32>
      %207 = vector.shape_cast %206 : vector<8xf32> to vector<8x1xf32>
      %208 = tpu.reciprocal %207 {approx = true} : vector<8x1xf32> -> vector<8x1xf32>
      %209 = vector.broadcast %208 : vector<8x1xf32> to vector<8x8xf32>
      %210 = arith.mulf %205, %209 : vector<8x8xf32>
      %211 = arith.truncf %210 : vector<8x8xf32> to vector<8x8xbf16>
      %cst_118 = arith.constant dense<0.000000e+00> : vector<8x8xf32>
      %212 = tpu.matmul %211, %197, %cst_118 {dimension_numbers = #tpu.dot_dimension_numbers<[1], [0], [0], [1], [0, 0, 1, 1], [], []>} : vector<8x8xbf16>, vector<8x8xbf16>, vector<8x8xf32> -> vector<8x8xf32>
      %213 = arith.truncf %212 : vector<8x8xf32> to vector<8x8xbf16>
      %214 = arith.index_cast %c0_i32_107 : i32 to index
      %c0_119 = arith.constant 0 : index
      %c0_120 = arith.constant 0 : index
      %215 = vector.load %arg7[%214, %c0_119, %c0_120] : memref<4x8x32xbf16, #tpu.memory_space<vmem>>, vector<1x8x32xbf16>
      %216 = vector.shape_cast %215 : vector<1x8x32xbf16> to vector<8x32xbf16>
      %cst_121 = arith.constant dense<0.000000e+00> : vector<8x32xf32>
      %217 = tpu.matmul %213, %216, %cst_121 {dimension_numbers = #tpu.dot_dimension_numbers<[1], [0], [0], [1], [0, 0, 1, 1], [], []>} : vector<8x8xbf16>, vector<8x32xbf16>, vector<8x32xf32> -> vector<8x32xf32>
      %218 = arith.addf %185, %217 : vector<8x32xf32>
      %c1_i32_122 = arith.constant 1 : i32
      %219 = arith.index_cast %c1_i32_122 : i32 to index
      %220 = arith.index_cast %arg16 : i32 to index
      %c0_123 = arith.constant 0 : index
      %c0_124 = arith.constant 0 : index
      %221 = vector.load %arg13[%219, %220, %c0_123, %c0_124] : memref<4x2x8x8xbf16, #tpu.memory_space<vmem>>, vector<1x1x8x8xbf16>
      %222 = vector.shape_cast %221 : vector<1x1x8x8xbf16> to vector<8x8xbf16>
      %223 = arith.index_cast %c1_i32_122 : i32 to index
      %224 = arith.index_cast %arg16 : i32 to index
      %c0_125 = arith.constant 0 : index
      %c0_126 = arith.constant 0 : index
      %225 = vector.load %arg14[%223, %224, %c0_125, %c0_126] : memref<4x2x8x8xbf16, #tpu.memory_space<vmem>>, vector<1x1x8x8xbf16>
      %226 = vector.shape_cast %225 : vector<1x1x8x8xbf16> to vector<8x8xbf16>
      %227 = arith.index_cast %c1_i32_122 : i32 to index
      %228 = arith.index_cast %arg16 : i32 to index
      %c0_127 = arith.constant 0 : index
      %c0_128 = arith.constant 0 : index
      %229 = vector.load %arg15[%227, %228, %c0_127, %c0_128] : memref<4x2x8x8xbf16, #tpu.memory_space<vmem>>, vector<1x1x8x8xbf16>
      %230 = vector.shape_cast %229 : vector<1x1x8x8xbf16> to vector<8x8xbf16>
      %cst_129 = arith.constant dense<0.000000e+00> : vector<8x8xf32>
      %231 = tpu.matmul %222, %226, %cst_129 {dimension_numbers = #tpu.dot_dimension_numbers<[1], [1], [0], [0], [0, 0, 1, 0], [], []>} : vector<8x8xbf16>, vector<8x8xbf16>, vector<8x8xf32> -> vector<8x8xf32>
      %cst_130 = arith.constant 0.353553385 : f32
      %232 = vector.broadcast %cst_130 : f32 to vector<8x8xf32>
      %233 = arith.mulf %231, %232 : vector<8x8xf32>
      %cst_131 = arith.constant dense<0xFF800000> : vector<8xf32>
      %234 = vector.multi_reduction <maximumf>, %233, %cst_131 [1] : vector<8x8xf32> to vector<8xf32>
      %235 = vector.shape_cast %234 : vector<8xf32> to vector<8x1xf32>
      %236 = vector.broadcast %235 : vector<8x1xf32> to vector<8x8xf32>
      %237 = arith.subf %233, %236 : vector<8x8xf32>
      %238 = math.exp %237 : vector<8x8xf32>
      %cst_132 = arith.constant dense<0.000000e+00> : vector<8xf32>
      %239 = vector.multi_reduction <add>, %238, %cst_132 [1] : vector<8x8xf32> to vector<8xf32>
      %240 = vector.shape_cast %239 : vector<8xf32> to vector<8x1xf32>
      %241 = tpu.reciprocal %240 {approx = true} : vector<8x1xf32> -> vector<8x1xf32>
      %242 = vector.broadcast %241 : vector<8x1xf32> to vector<8x8xf32>
      %243 = arith.mulf %238, %242 : vector<8x8xf32>
      %244 = arith.truncf %243 : vector<8x8xf32> to vector<8x8xbf16>
      %cst_133 = arith.constant dense<0.000000e+00> : vector<8x8xf32>
      %245 = tpu.matmul %244, %230, %cst_133 {dimension_numbers = #tpu.dot_dimension_numbers<[1], [0], [0], [1], [0, 0, 1, 1], [], []>} : vector<8x8xbf16>, vector<8x8xbf16>, vector<8x8xf32> -> vector<8x8xf32>
      %246 = arith.truncf %245 : vector<8x8xf32> to vector<8x8xbf16>
      %247 = arith.index_cast %c1_i32_122 : i32 to index
      %c0_134 = arith.constant 0 : index
      %c0_135 = arith.constant 0 : index
      %248 = vector.load %arg7[%247, %c0_134, %c0_135] : memref<4x8x32xbf16, #tpu.memory_space<vmem>>, vector<1x8x32xbf16>
      %249 = vector.shape_cast %248 : vector<1x8x32xbf16> to vector<8x32xbf16>
      %cst_136 = arith.constant dense<0.000000e+00> : vector<8x32xf32>
      %250 = tpu.matmul %246, %249, %cst_136 {dimension_numbers = #tpu.dot_dimension_numbers<[1], [0], [0], [1], [0, 0, 1, 1], [], []>} : vector<8x8xbf16>, vector<8x32xbf16>, vector<8x32xf32> -> vector<8x32xf32>
      %251 = arith.addf %218, %250 : vector<8x32xf32>
      %c2_i32_137 = arith.constant 2 : i32
      %252 = arith.index_cast %c2_i32_137 : i32 to index
      %253 = arith.index_cast %arg16 : i32 to index
      %c0_138 = arith.constant 0 : index
      %c0_139 = arith.constant 0 : index
      %254 = vector.load %arg13[%252, %253, %c0_138, %c0_139] : memref<4x2x8x8xbf16, #tpu.memory_space<vmem>>, vector<1x1x8x8xbf16>
      %255 = vector.shape_cast %254 : vector<1x1x8x8xbf16> to vector<8x8xbf16>
      %256 = arith.index_cast %c2_i32_137 : i32 to index
      %257 = arith.index_cast %arg16 : i32 to index
      %c0_140 = arith.constant 0 : index
      %c0_141 = arith.constant 0 : index
      %258 = vector.load %arg14[%256, %257, %c0_140, %c0_141] : memref<4x2x8x8xbf16, #tpu.memory_space<vmem>>, vector<1x1x8x8xbf16>
      %259 = vector.shape_cast %258 : vector<1x1x8x8xbf16> to vector<8x8xbf16>
      %260 = arith.index_cast %c2_i32_137 : i32 to index
      %261 = arith.index_cast %arg16 : i32 to index
      %c0_142 = arith.constant 0 : index
      %c0_143 = arith.constant 0 : index
      %262 = vector.load %arg15[%260, %261, %c0_142, %c0_143] : memref<4x2x8x8xbf16, #tpu.memory_space<vmem>>, vector<1x1x8x8xbf16>
      %263 = vector.shape_cast %262 : vector<1x1x8x8xbf16> to vector<8x8xbf16>
      %cst_144 = arith.constant dense<0.000000e+00> : vector<8x8xf32>
      %264 = tpu.matmul %255, %259, %cst_144 {dimension_numbers = #tpu.dot_dimension_numbers<[1], [1], [0], [0], [0, 0, 1, 0], [], []>} : vector<8x8xbf16>, vector<8x8xbf16>, vector<8x8xf32> -> vector<8x8xf32>
      %cst_145 = arith.constant 0.353553385 : f32
      %265 = vector.broadcast %cst_145 : f32 to vector<8x8xf32>
      %266 = arith.mulf %264, %265 : vector<8x8xf32>
      %cst_146 = arith.constant dense<0xFF800000> : vector<8xf32>
      %267 = vector.multi_reduction <maximumf>, %266, %cst_146 [1] : vector<8x8xf32> to vector<8xf32>
      %268 = vector.shape_cast %267 : vector<8xf32> to vector<8x1xf32>
      %269 = vector.broadcast %268 : vector<8x1xf32> to vector<8x8xf32>
      %270 = arith.subf %266, %269 : vector<8x8xf32>
      %271 = math.exp %270 : vector<8x8xf32>
      %cst_147 = arith.constant dense<0.000000e+00> : vector<8xf32>
      %272 = vector.multi_reduction <add>, %271, %cst_147 [1] : vector<8x8xf32> to vector<8xf32>
      %273 = vector.shape_cast %272 : vector<8xf32> to vector<8x1xf32>
      %274 = tpu.reciprocal %273 {approx = true} : vector<8x1xf32> -> vector<8x1xf32>
      %275 = vector.broadcast %274 : vector<8x1xf32> to vector<8x8xf32>
      %276 = arith.mulf %271, %275 : vector<8x8xf32>
      %277 = arith.truncf %276 : vector<8x8xf32> to vector<8x8xbf16>
      %cst_148 = arith.constant dense<0.000000e+00> : vector<8x8xf32>
      %278 = tpu.matmul %277, %263, %cst_148 {dimension_numbers = #tpu.dot_dimension_numbers<[1], [0], [0], [1], [0, 0, 1, 1], [], []>} : vector<8x8xbf16>, vector<8x8xbf16>, vector<8x8xf32> -> vector<8x8xf32>
      %279 = arith.truncf %278 : vector<8x8xf32> to vector<8x8xbf16>
      %280 = arith.index_cast %c2_i32_137 : i32 to index
      %c0_149 = arith.constant 0 : index
      %c0_150 = arith.constant 0 : index
      %281 = vector.load %arg7[%280, %c0_149, %c0_150] : memref<4x8x32xbf16, #tpu.memory_space<vmem>>, vector<1x8x32xbf16>
      %282 = vector.shape_cast %281 : vector<1x8x32xbf16> to vector<8x32xbf16>
      %cst_151 = arith.constant dense<0.000000e+00> : vector<8x32xf32>
      %283 = tpu.matmul %279, %282, %cst_151 {dimension_numbers = #tpu.dot_dimension_numbers<[1], [0], [0], [1], [0, 0, 1, 1], [], []>} : vector<8x8xbf16>, vector<8x32xbf16>, vector<8x32xf32> -> vector<8x32xf32>
      %284 = arith.addf %251, %283 : vector<8x32xf32>
      %c3_i32_152 = arith.constant 3 : i32
      %285 = arith.index_cast %c3_i32_152 : i32 to index
      %286 = arith.index_cast %arg16 : i32 to index
      %c0_153 = arith.constant 0 : index
      %c0_154 = arith.constant 0 : index
      %287 = vector.load %arg13[%285, %286, %c0_153, %c0_154] : memref<4x2x8x8xbf16, #tpu.memory_space<vmem>>, vector<1x1x8x8xbf16>
      %288 = vector.shape_cast %287 : vector<1x1x8x8xbf16> to vector<8x8xbf16>
      %289 = arith.index_cast %c3_i32_152 : i32 to index
      %290 = arith.index_cast %arg16 : i32 to index
      %c0_155 = arith.constant 0 : index
      %c0_156 = arith.constant 0 : index
      %291 = vector.load %arg14[%289, %290, %c0_155, %c0_156] : memref<4x2x8x8xbf16, #tpu.memory_space<vmem>>, vector<1x1x8x8xbf16>
      %292 = vector.shape_cast %291 : vector<1x1x8x8xbf16> to vector<8x8xbf16>
      %293 = arith.index_cast %c3_i32_152 : i32 to index
      %294 = arith.index_cast %arg16 : i32 to index
      %c0_157 = arith.constant 0 : index
      %c0_158 = arith.constant 0 : index
      %295 = vector.load %arg15[%293, %294, %c0_157, %c0_158] : memref<4x2x8x8xbf16, #tpu.memory_space<vmem>>, vector<1x1x8x8xbf16>
      %296 = vector.shape_cast %295 : vector<1x1x8x8xbf16> to vector<8x8xbf16>
      %cst_159 = arith.constant dense<0.000000e+00> : vector<8x8xf32>
      %297 = tpu.matmul %288, %292, %cst_159 {dimension_numbers = #tpu.dot_dimension_numbers<[1], [1], [0], [0], [0, 0, 1, 0], [], []>} : vector<8x8xbf16>, vector<8x8xbf16>, vector<8x8xf32> -> vector<8x8xf32>
      %cst_160 = arith.constant 0.353553385 : f32
      %298 = vector.broadcast %cst_160 : f32 to vector<8x8xf32>
      %299 = arith.mulf %297, %298 : vector<8x8xf32>
      %cst_161 = arith.constant dense<0xFF800000> : vector<8xf32>
      %300 = vector.multi_reduction <maximumf>, %299, %cst_161 [1] : vector<8x8xf32> to vector<8xf32>
      %301 = vector.shape_cast %300 : vector<8xf32> to vector<8x1xf32>
      %302 = vector.broadcast %301 : vector<8x1xf32> to vector<8x8xf32>
      %303 = arith.subf %299, %302 : vector<8x8xf32>
      %304 = math.exp %303 : vector<8x8xf32>
      %cst_162 = arith.constant dense<0.000000e+00> : vector<8xf32>
      %305 = vector.multi_reduction <add>, %304, %cst_162 [1] : vector<8x8xf32> to vector<8xf32>
      %306 = vector.shape_cast %305 : vector<8xf32> to vector<8x1xf32>
      %307 = tpu.reciprocal %306 {approx = true} : vector<8x1xf32> -> vector<8x1xf32>
      %308 = vector.broadcast %307 : vector<8x1xf32> to vector<8x8xf32>
      %309 = arith.mulf %304, %308 : vector<8x8xf32>
      %310 = arith.truncf %309 : vector<8x8xf32> to vector<8x8xbf16>
      %cst_163 = arith.constant dense<0.000000e+00> : vector<8x8xf32>
      %311 = tpu.matmul %310, %296, %cst_163 {dimension_numbers = #tpu.dot_dimension_numbers<[1], [0], [0], [1], [0, 0, 1, 1], [], []>} : vector<8x8xbf16>, vector<8x8xbf16>, vector<8x8xf32> -> vector<8x8xf32>
      %312 = arith.truncf %311 : vector<8x8xf32> to vector<8x8xbf16>
      %313 = arith.index_cast %c3_i32_152 : i32 to index
      %c0_164 = arith.constant 0 : index
      %c0_165 = arith.constant 0 : index
      %314 = vector.load %arg7[%313, %c0_164, %c0_165] : memref<4x8x32xbf16, #tpu.memory_space<vmem>>, vector<1x8x32xbf16>
      %315 = vector.shape_cast %314 : vector<1x8x32xbf16> to vector<8x32xbf16>
      %cst_166 = arith.constant dense<0.000000e+00> : vector<8x32xf32>
      %316 = tpu.matmul %312, %315, %cst_166 {dimension_numbers = #tpu.dot_dimension_numbers<[1], [0], [0], [1], [0, 0, 1, 1], [], []>} : vector<8x8xbf16>, vector<8x32xbf16>, vector<8x32xf32> -> vector<8x32xf32>
      %317 = arith.addf %284, %316 : vector<8x32xf32>
      %c4_i32_167 = arith.constant 4 : i32
      %318 = vector.broadcast %183 : vector<1x32xf32> to vector<8x32xf32>
      %319 = arith.addf %317, %318 : vector<8x32xf32>
      %c8_i32 = arith.constant 8 : i32
      %320 = arith.muli %arg16, %c8_i32 : i32
      %321 = tpu.assume_multiple %320, 8 : i32
      %322 = arith.index_cast %321 : i32 to index
      %c0_168 = arith.constant 0 : index
      %323 = vector.load %arg12[%322, %c0_168] : memref<16x32xf32, #tpu.memory_space<vmem>>, vector<8x32xf32>
      tpu.vector_store %arg12[%322, %c0_168], %319 {strides = array<i32>} : memref<16x32xf32, #tpu.memory_space<vmem>>, vector<8x32xf32>,
    }
    %c2_i32_105 = arith.constant 2 : i32
    return
  }
  func.func @transform_0(%arg0: i32) -> (i32, i32) {
    %c0_i32 = arith.constant 0 : i32
    %c0_i32_0 = arith.constant 0 : i32
    return %arg0, %c0_i32 : i32, i32
  }
  func.func @transform_1(%arg0: i32) -> (i32, i32) {
    %c0_i32 = arith.constant 0 : i32
    %c0_i32_0 = arith.constant 0 : i32
    return %arg0, %c0_i32 : i32, i32
  }
  func.func @transform_2(%arg0: i32) -> (i32, i32) {
    %c0_i32 = arith.constant 0 : i32
    %c0_i32_0 = arith.constant 0 : i32
    return %arg0, %c0_i32 : i32, i32
  }
  func.func @transform_3(%arg0: i32) -> (i32, i32, i32) {
    %c0_i32 = arith.constant 0 : i32
    %c0_i32_0 = arith.constant 0 : i32
    %c0_i32_1 = arith.constant 0 : i32
    %c0_i32_2 = arith.constant 0 : i32
    return %c0_i32, %c0_i32_0, %c0_i32_1 : i32, i32, i32
  }
  func.func @transform_4(%arg0: i32) -> (i32, i32, i32) {
    %c0_i32 = arith.constant 0 : i32
    %c0_i32_0 = arith.constant 0 : i32
    %c0_i32_1 = arith.constant 0 : i32
    %c0_i32_2 = arith.constant 0 : i32
    return %c0_i32, %c0_i32_0, %c0_i32_1 : i32, i32, i32
  }
  func.func @transform_5(%arg0: i32) -> (i32, i32, i32) {
    %c0_i32 = arith.constant 0 : i32
    %c0_i32_0 = arith.constant 0 : i32
    %c0_i32_1 = arith.constant 0 : i32
    %c0_i32_2 = arith.constant 0 : i32
    return %c0_i32, %c0_i32_0, %c0_i32_1 : i32, i32, i32
  }
  func.func @transform_6(%arg0: i32) -> (i32, i32, i32) {
    %c0_i32 = arith.constant 0 : i32
    %c0_i32_0 = arith.constant 0 : i32
    %c0_i32_1 = arith.constant 0 : i32
    %c0_i32_2 = arith.constant 0 : i32
    return %c0_i32, %c0_i32_0, %c0_i32_1 : i32, i32, i32
  }
  func.func @transform_7(%arg0: i32) -> (i32, i32, i32) {
    %c0_i32 = arith.constant 0 : i32
    %c0_i32_0 = arith.constant 0 : i32
    %c0_i32_1 = arith.constant 0 : i32
    %c0_i32_2 = arith.constant 0 : i32
    return %c0_i32, %c0_i32_0, %c0_i32_1 : i32, i32, i32
  }
  func.func @transform_8(%arg0: i32) -> (i32, i32, i32) {
    %c0_i32 = arith.constant 0 : i32
    %c0_i32_0 = arith.constant 0 : i32
    %c0_i32_1 = arith.constant 0 : i32
    %c0_i32_2 = arith.constant 0 : i32
    return %c0_i32, %c0_i32_0, %c0_i32_1 : i32, i32, i32
  }
  func.func @transform_9(%arg0: i32) -> (i32, i32, i32) {
    %c0_i32 = arith.constant 0 : i32
    %c0_i32_0 = arith.constant 0 : i32
    %c0_i32_1 = arith.constant 0 : i32
    %c0_i32_2 = arith.constant 0 : i32
    return %c0_i32, %c0_i32_0, %c0_i32_1 : i32, i32, i32
  }
  func.func @transform_10(%arg0: i32) -> (i32, i32) {
    %c0_i32 = arith.constant 0 : i32
    %c0_i32_0 = arith.constant 0 : i32
    %c0_i32_1 = arith.constant 0 : i32
    return %c0_i32, %c0_i32_0 : i32, i32
  }
  func.func @transform_11(%arg0: i32) -> (i32, i32) {
    %c0_i32 = arith.constant 0 : i32
    %c0_i32_0 = arith.constant 0 : i32
    return %arg0, %c0_i32 : i32, i32
  }
}

</mosaic_0001>

<bundles_post_ra>
// kernel: tpu_custom_call.1
= control target key start
LH: loop header
LB: loop body
LE: loop exit
PB: predicated region body
PF: predicated region fallthrough
CT: control target
= control target key end

     0   :  { %16 = vsyncpa [#allocation6], 0  ;;  %vm71_vm0 = vcmask 261120   ;;  %vm175_vm1 = vcmask 60416   ;;  %s1566_s0 = inlined_call_operand.vmem [shape: bf16[16,32], index: 0, kind: input, shape index: {}]   ;;  %s1567_s1 = inlined_call_operand.vmem [shape: bf16[16,32], index: 1, kind: input, shape index: {}]   ;;  %s1568_s2 = inlined_call_operand.vmem [shape: bf16[16,32], index: 2, kind: input, shape index: {}]   ;;  %s1569_s3 = inlined_call_operand.vmem [shape: bf16[4,32,8], index: 3, kind: input, shape index: {}]   ;;  %s1570_s4 = inlined_call_operand.vmem [shape: bf16[4,32,8], index: 4, kind: input, shape index: {}]   ;;  %s1571_s5 = inlined_call_operand.vmem [shape: bf16[4,32,8], index: 5, kind: input, shape index: {}]   ;;  %s1572_s6 = inlined_call_operand.vmem [shape: bf16[4,8,32], index: 6, kind: input, shape index: {}]   ;;  %s1573_s7 = inlined_call_operand.vmem [shape: f32[4,1,8], index: 7, kind: input, shape index: {}]   ;;  %s1574_s8 = inlined_call_operand.vmem [shape: f32[4,1,8], index: 8, kind: input, shape index: {}]   ;;  %s1575_s9 = inlined_call_operand.vmem [shape: f32[4,1,8], index: 9, kind: input, shape index: {}]   ;;  %s1576_s10 = inlined_call_operand.vmem [shape: f32[1,32], index: 10, kind: input, shape index: {}]   ;;  %s1577_s11 = inlined_call_operand.hbm [shape: f32[16,32], index: 11, kind: output, shape index: {}]  }
   0x1   :  { %v1167_v0 = vld [vmem:[%s1569_s3 + $0x8] sm:$0xff]  ;;  %v1173_v3 = vld [vmem:[%s1569_s3 + $0x18] sm:$0xff]  ;;  %v1166_v4 = vld [vmem:[%s1569_s3] sm:$0xff] }
   0x2   :  { %v1169_v1 = vld [vmem:[%s1570_s4 + $0x8] sm:$0xff]  ;;  %81 = vmatpush.bf16.msra.mxu0 %v1167_v0  ;;  %v1168_v5 = vld [vmem:[%s1570_s4] sm:$0xff]  ;;  %214 = vmatpush.bf16.msra.mxu3 %v1173_v3  ;;  %v1172_v7 = vld [vmem:[%s1569_s3 + $0x10] sm:$0xff] }
   0x3   :  { %v1171_v2 = vld [vmem:[%s1571_s5 + $0x8] sm:$0xff]  ;;  %123 = vmatpush.bf16.msra.mxu1 %v1169_v1  ;;  %v1170_v6 = vld [vmem:[%s1571_s5] sm:$0xff]  ;;  %v1175_v13 = vld [vmem:[%s1570_s4 + $0x18] sm:$0xff] }
   0x4   :  { %165 = vmatpush.bf16.msra.mxu2 %v1171_v2  ;;  %v1179_v8 = vld [vmem:[%s1569_s3 + $0x28] sm:$0xff]  ;;  %v1163_v10 = vld [vmem:[%s1566_s0] sm:$0xff]  ;;  %v1177_v14 = vld [vmem:[%s1571_s5 + $0x18] sm:$0xff] }
   0x5   :  { %v1181_v9 = vld [vmem:[%s1570_s4 + $0x28] sm:$0xff]  ;;  %v1164_v11 = vld [vmem:[%s1567_s1] sm:$0xff]  ;;  %v1187_v17 = vld [vmem:[%s1570_s4 + $0x38] sm:$0xff] }
   0x6   :  { %82 = vmatpush.bf16.msra.mxu0 %v1166_v4  ;;  %v1165_v12 = vld [vmem:[%s1568_s2] sm:$0xff]  ;;  %215 = vmatpush.bf16.msra.mxu3 %v1172_v7  ;;  %v1174_v18 = vld [vmem:[%s1570_s4 + $0x10] sm:$0xff]  ;;  %v1189_v20 = vld [vmem:[%s1571_s5 + $0x38] sm:$0xff] }
   0x7   :  { %124 = vmatpush.bf16.msra.mxu1 %v1168_v5  ;;  %v1178_v15 = vld [vmem:[%s1569_s3 + $0x20] sm:$0xff]  ;;  %v1176_v19 = vld [vmem:[%s1571_s5 + $0x10] sm:$0xff]  ;;  %v1183_v21 = vld [vmem:[%s1571_s5 + $0x28] sm:$0xff] }
   0x8   :  { %166 = vmatpush.bf16.msra.mxu2 %v1170_v6  ;;  %v1180_v16 = vld [vmem:[%s1570_s4 + $0x20] sm:$0xff]  ;;  %v1185_v22 = vld [vmem:[%s1569_s3 + $0x38] sm:$0xff]  ;;  %v1186_v23 = vld [vmem:[%s1570_s4 + $0x30] sm:$0xff] }
   0x9   :  { %973 = vmatmul.msk.bf16.vlgmr.msra.gmra.mxu0 %vm71_vm0, %v1163_v10  ;;  %1013 = vmatmul.msk.bf16.vlgmr.msra.gmra.mxu3 %vm71_vm0, %v1163_v10  ;;  %v1188_v24 = vld [vmem:[%s1571_s5 + $0x30] sm:$0xff]  ;;  %v1182_v25 = vld [vmem:[%s1571_s5 + $0x20] sm:$0xff] }
   0xa   :  { %373 = vmatpush.bf16.msrb.mxu3 %v1181_v9  ;;  %986 = vmatmul.msk.bf16.vlgmr.msra.gmra.mxu1 %vm71_vm0, %v1164_v11  ;;  %v1184_v26 = vld [vmem:[%s1569_s3 + $0x30] sm:$0xff]  ;;  %v1201_v27 = vld [vmem:[%s1573_s7] ss:$0 sm:$0xff]  ;;  %v1204_v36 = vld [vmem:[%s1573_s7 + $0x1] ss:$0 sm:$0xff] }
   0xb   :  { %999 = vmatmul.msk.bf16.vlgmr.msra.gmra.mxu2 %vm71_vm0, %v1165_v12  ;;  %250 = vmatpush.bf16.msrb.mxu0 %v1175_v13  ;;  %v1202_v28 = vld [vmem:[%s1574_s8] ss:$0 sm:$0xff]  ;;  %v1205_v49 = vld [vmem:[%s1574_s8 + $0x1] ss:$0 sm:$0xff]  ;;  %v1207_v63 = vld [vmem:[%s1573_s7 + $0x2] ss:$0 sm:$0xff] }
   0xc   :  { %337 = vmatpush.bf16.msrb.mxu2 %v1179_v8  ;;  %286 = vmatpush.bf16.msrb.mxu1 %v1177_v14  ;;  %v1203_v35 = vld [vmem:[%s1575_s9] ss:$0 sm:$0xff]  ;;  %v1206_v50 = vld [vmem:[%s1575_s9 + $0x1] ss:$0 sm:$0xff]  ;;  %v1208_v0 = vld [vmem:[%s1574_s8 + $0x2] ss:$0 sm:$0xff] }
   0xd   :  { %v1454_v1 = vld [vmem:[%s1576_s10] sm:$0x1]  ;;  %v1209_v14 = vld [vmem:[%s1575_s9 + $0x2] ss:$0 sm:$0xff] }
   0xe   :  { %374 = vmatpush.bf16.msrb.mxu3 %v1180_v16 }
   0xf   :  { %251 = vmatpush.bf16.msrb.mxu0 %v1174_v18 }
  0x10   :  { %338 = vmatpush.bf16.msrb.mxu2 %v1178_v15  ;;  %287 = vmatpush.bf16.msrb.mxu1 %v1176_v19  ;;  %v1210_v15 = vld [vmem:[%s1573_s7 + $0x3] ss:$0 sm:$0xff] }
  0x12   :  { %532 = vmatpush.bf16.msra.mxu3 %v1189_v20 }
  0x13   :  { %409 = vmatpush.bf16.msra.mxu0 %v1183_v21 }
  0x14   :  { %496 = vmatpush.bf16.msra.mxu2 %v1187_v17  ;;  %460 = vmatpush.bf16.msra.mxu1 %v1185_v22 }
  0x16   :  { %533 = vmatpush.bf16.msra.mxu3 %v1188_v24 }
  0x17   :  { %410 = vmatpush.bf16.msra.mxu0 %v1182_v25 }
  0x18   :  { %497 = vmatpush.bf16.msra.mxu2 %v1186_v23  ;;  %461 = vmatpush.bf16.msra.mxu1 %v1184_v26 }
  0x19   :  { %1027 = vmatmul.msk.bf16.vlgmr.msrb.gmra.mxu0 %vm71_vm0, %v1164_v11  ;;  %1069 = vmatmul.msk.bf16.vlgmr.msrb.gmra.mxu3 %vm71_vm0, %v1164_v11 }
  0x1a   :  { %1041 = vmatmul.msk.bf16.vlgmr.msrb.gmra.mxu1 %vm71_vm0, %v1165_v12 }
  0x1b   :  { %1055 = vmatmul.msk.bf16.vlgmr.msrb.gmra.mxu2 %vm71_vm0, %v1163_v10 }
  0x29   :  { %1083 = vmatmul.msk.bf16.vlgmr.msra.gmra.mxu0 %vm71_vm0, %v1165_v12  ;;  %1125 = vmatmul.msk.bf16.vlgmr.msra.gmra.mxu3 %vm71_vm0, %v1165_v12 }
  0x2a   :  { %1097 = vmatmul.msk.bf16.vlgmr.msra.gmra.mxu1 %vm71_vm0, %v1163_v10 }
  0x2b   :  { %1111 = vmatmul.msk.bf16.vlgmr.msra.gmra.mxu2 %vm71_vm0, %v1164_v11 }
  0x86   :  { %v84_v29 = vpop.f32.mrf.mxu0 }
  0x87   :  { %v126_v30 = vpop.f32.mrf.mxu1  ;;  %v85_v31 = vadd.f32 %v1201_v27, %v84_v29  ;;  %v1212_v29 = vld [vmem:[%s1575_s9 + $0x3] ss:$0 sm:$0xff] }
  0x88   :  { %v127_v32 = vadd.f32 %v1202_v28, %v126_v30 }
  0x89   :  { %v173_v33 = vpack.c.bf16 %v85_v31, %v85_v31 }
  0x8a   :  { %v178_v34 = vpack.c.bf16 %v127_v32, %v127_v32 }
  0x8b   :  { %176 = vst.msk [vmem:[#allocation2] sm:$0xf] %vm175_vm1, %v173_v33 }
  0x8c   :  { %180 = vst.msk [vmem:[#allocation3] sm:$0xf] %vm175_vm1, %v178_v34  ;;  %v217_v38 = vpop.f32.mrf.mxu3 }
  0x8d   :  { %v218_v40 = vadd.f32 %v1204_v36, %v217_v38 }
  0x8e   :  { %v168_v37 = vpop.f32.mrf.mxu2  ;;  %v86_v41 = vpop.f32.mrf.mxu0 }
  0x8f   :  { %v169_v39 = vadd.f32 %v1203_v35, %v168_v37  ;;  %v128_v42 = vpop.f32.mrf.mxu1  ;;  %v87_v43 = vadd.f32 %v1201_v27, %v86_v41  ;;  %v294_v46 = vpack.c.bf16 %v218_v40, %v218_v40 }
  0x90   :  { %v129_v44 = vadd.f32 %v1202_v28, %v128_v42  ;;  %v1211_v28 = vld [vmem:[%s1574_s8 + $0x3] ss:$0 sm:$0xff]  ;;  %s1484_s8 = smov 0  }
  0x91   :  { %v182_v45 = vpack.c.bf16 %v169_v39, %v169_v39  ;;  %v174_v47 = vpack.c.bf16 %v87_v43, %v87_v43  ;;  %297 = vst.msk [vmem:[#allocation2 + $0x8] sm:$0xf] %vm175_vm1, %v294_v46 }
  0x92   :  { %v179_v48 = vpack.c.bf16 %v129_v44, %v129_v44 }
  0x93   :  { %184 = vst.msk [vmem:[#allocation4] sm:$0xf] %vm175_vm1, %v182_v45 }
  0x94   :  { %177 = vst.msk [vmem:[#allocation2 + $0x4] sm:$0xf] %vm175_vm1, %v174_v47  ;;  %v219_v52 = vpop.f32.mrf.mxu3 }
  0x95   :  { %181 = vst.msk [vmem:[#allocation3 + $0x4] sm:$0xf] %vm175_vm1, %v179_v48  ;;  %v220_v54 = vadd.f32 %v1204_v36, %v219_v52 }
  0x96   :  { %v170_v51 = vpop.f32.mrf.mxu2  ;;  %v253_v55 = vpop.f32.mrf.mxu0 }
  0x97   :  { %v171_v53 = vadd.f32 %v1203_v35, %v170_v51  ;;  %v289_v56 = vpop.f32.mrf.mxu1  ;;  %v254_v57 = vadd.f32 %v1205_v49, %v253_v55  ;;  %v295_v60 = vpack.c.bf16 %v220_v54, %v220_v54 }
  0x98   :  { %v290_v58 = vadd.f32 %v1206_v50, %v289_v56 }
  0x99   :  { %v183_v59 = vpack.c.bf16 %v171_v53, %v171_v53  ;;  %v299_v61 = vpack.c.bf16 %v254_v57, %v254_v57  ;;  %298 = vst.msk [vmem:[#allocation2 + $0xc] sm:$0xf] %vm175_vm1, %v295_v60 }
  0x9a   :  { %v304_v62 = vpack.c.bf16 %v290_v58, %v290_v58 }
  0x9b   :  { %185 = vst.msk [vmem:[#allocation4 + $0x4] sm:$0xf] %vm175_vm1, %v183_v59 }
  0x9c   :  { %302 = vst.msk [vmem:[#allocation3 + $0x8] sm:$0xf] %vm175_vm1, %v299_v61  ;;  %v376_v3 = vpop.f32.mrf.mxu3 }
  0x9d   :  { %307 = vst.msk [vmem:[#allocation4 + $0x8] sm:$0xf] %vm175_vm1, %v304_v62  ;;  %v377_v5 = vadd.f32 %v1208_v0, %v376_v3 }
  0x9e   :  { %v340_v2 = vpop.f32.mrf.mxu2  ;;  %v255_v6 = vpop.f32.mrf.mxu0 }
  0x9f   :  { %v341_v4 = vadd.f32 %v1207_v63, %v340_v2  ;;  %v291_v7 = vpop.f32.mrf.mxu1  ;;  %v256_v8 = vadd.f32 %v1205_v49, %v255_v6  ;;  %v422_v11 = vpack.c.bf16 %v377_v5, %v377_v5 }
  0xa0   :  { %v292_v9 = vadd.f32 %v1206_v50, %v291_v7 }
  0xa1   :  { %v417_v10 = vpack.c.bf16 %v341_v4, %v341_v4  ;;  %v300_v12 = vpack.c.bf16 %v256_v8, %v256_v8  ;;  %425 = vst.msk [vmem:[#allocation3 + $0x10] sm:$0xf] %vm175_vm1, %v422_v11 }
  0xa2   :  { %v305_v13 = vpack.c.bf16 %v292_v9, %v292_v9 }
  0xa3   :  { %420 = vst.msk [vmem:[#allocation2 + $0x10] sm:$0xf] %vm175_vm1, %v417_v10 }
  0xa4   :  { %303 = vst.msk [vmem:[#allocation3 + $0xc] sm:$0xf] %vm175_vm1, %v300_v12  ;;  %v378_v17 = vpop.f32.mrf.mxu3 }
  0xa5   :  { %308 = vst.msk [vmem:[#allocation4 + $0xc] sm:$0xf] %vm175_vm1, %v305_v13  ;;  %v379_v19 = vadd.f32 %v1208_v0, %v378_v17 }
  0xa6   :  { %v342_v16 = vpop.f32.mrf.mxu2  ;;  %v412_v20 = vpop.f32.mrf.mxu0 }
  0xa7   :  { %v343_v18 = vadd.f32 %v1207_v63, %v342_v16  ;;  %v463_v21 = vpop.f32.mrf.mxu1  ;;  %v413_v22 = vadd.f32 %v1209_v14, %v412_v20  ;;  %v423_v25 = vpack.c.bf16 %v379_v19, %v379_v19 }
  0xa8   :  { %v464_v23 = vadd.f32 %v1210_v15, %v463_v21 }
  0xa9   :  { %v418_v24 = vpack.c.bf16 %v343_v18, %v343_v18  ;;  %v427_v26 = vpack.c.bf16 %v413_v22, %v413_v22  ;;  %426 = vst.msk [vmem:[#allocation3 + $0x14] sm:$0xf] %vm175_vm1, %v423_v25 }
  0xaa   :  { %v540_v27 = vpack.c.bf16 %v464_v23, %v464_v23 }
  0xab   :  { %421 = vst.msk [vmem:[#allocation2 + $0x14] sm:$0xf] %vm175_vm1, %v418_v24 }
  0xac   :  { %430 = vst.msk [vmem:[#allocation4 + $0x10] sm:$0xf] %vm175_vm1, %v427_v26  ;;  %v535_v31 = vpop.f32.mrf.mxu3 }
  0xad   :  { %543 = vst.msk [vmem:[#allocation2 + $0x18] sm:$0xf] %vm175_vm1, %v540_v27  ;;  %v536_v33 = vadd.f32 %v1212_v29, %v535_v31 }
  0xae   :  { %v499_v30 = vpop.f32.mrf.mxu2  ;;  %v414_v34 = vpop.f32.mrf.mxu0 }
  0xaf   :  { %v500_v32 = vadd.f32 %v1211_v28, %v499_v30  ;;  %v465_v35 = vpop.f32.mrf.mxu1  ;;  %v415_v36 = vadd.f32 %v1209_v14, %v414_v34  ;;  %v550_v39 = vpack.c.bf16 %v536_v33, %v536_v33 }
  0xb0   :  { %v466_v37 = vadd.f32 %v1210_v15, %v465_v35 }
  0xb1   :  { %v545_v38 = vpack.c.bf16 %v500_v32, %v500_v32  ;;  %v428_v40 = vpack.c.bf16 %v415_v36, %v415_v36  ;;  %553 = vst.msk [vmem:[#allocation4 + $0x18] sm:$0xf] %vm175_vm1, %v550_v39 }
  0xb2   :  { %v541_v41 = vpack.c.bf16 %v466_v37, %v466_v37 }
  0xb3   :  { %548 = vst.msk [vmem:[#allocation3 + $0x18] sm:$0xf] %vm175_vm1, %v545_v38 }
  0xb4   :  { %431 = vst.msk [vmem:[#allocation4 + $0x14] sm:$0xf] %vm175_vm1, %v428_v40  ;;  %v537_v43 = vpop.f32.mrf.mxu3 }
  0xb5   :  { %544 = vst.msk [vmem:[#allocation2 + $0x1c] sm:$0xf] %vm175_vm1, %v541_v41  ;;  %v538_v45 = vadd.f32 %v1212_v29, %v537_v43 }
  0xb6   :  { %v501_v42 = vpop.f32.mrf.mxu2 }
  0xb7   :  { %v502_v44 = vadd.f32 %v1211_v28, %v501_v42  ;;  %v551_v47 = vpack.c.bf16 %v538_v45, %v538_v45 }
  0xb9   :  { %v546_v46 = vpack.c.bf16 %v502_v44, %v502_v44  ;;  %554 = vst.msk [vmem:[#allocation4 + $0x1c] sm:$0xf] %vm175_vm1, %v551_v47 }
  0xbb   :  { %549 = vst.msk [vmem:[#allocation3 + $0x1c] sm:$0xf] %vm175_vm1, %v546_v46 }
  0xbc LB: > { %s1490_s9 = sshll.u32 %s1261_s8, 2  ;;  %vm571_vm2 = vcmask 64512   ;;  %vm607_vm3 = vcmask 1043456   ;;  %v625_v27 = vld [vmem:[%s1572_s6] sm:$0xf]  ;;  %s1162_s15 = sshll.u32 %s1261_s8, 3  ;;  %s1261_s8 = sphi %s1484_s8, %s561_s8  }
  0xbd   : > { %s1493_s1 = scalar_lea.vmem [#allocation3], %s1490_s9  ;;  %s1502_s3 = scalar_lea.vmem [#allocation2], %s1490_s9  ;;  %v713_v28 = vsel %vm607_vm3, %v625_v27, 0  ;;  %v1139_v43 = vld [vmem:[%s1572_s6 + $0x4] sm:$0xf] }
  0xbe   : > { %v564_v54 = vld [vmem:[%s1502_s3] sm:$0xf]  ;;  %v1132_v55 = vld [vmem:[%s1502_s3 + $0x8] sm:$0xf]  ;;  %v1143_v56 = vld [vmem:[%s1502_s3 + $0x10] sm:$0xf] }
  0xbf   : > { %s1517_s4 = scalar_lea.vmem [#allocation4], %s1490_s9  ;;  %v694_v44 = vsel %vm607_vm3, %v1139_v43, 0  ;;  %v1150_v45 = vld [vmem:[%s1572_s6 + $0x8] sm:$0xf]  ;;  %s901_s16 = scalar_lea.vmem [#allocation5], %s1162_s15 }
  0xc0   : > { %v570_v21 = vld [vmem:[%s1517_s4] sm:$0xf]  ;;  %v1136_v23 = vld [vmem:[%s1517_s4 + $0x8] sm:$0xf]  ;;  %v1147_v25 = vld [vmem:[%s1517_s4 + $0x10] sm:$0xf] }
  0xc1   : > { %v609_v22 = vsel %vm607_vm3, %v570_v21, 0  ;;  %v672_v24 = vsel %vm607_vm3, %v1136_v23, 0  ;;  %v774_v26 = vsel %vm607_vm3, %v1147_v25, 0  ;;  %v796_v46 = vsel %vm607_vm3, %v1150_v45, 0  ;;  %s561_s8 = sadd.s32 1, %s1261_s8  }
  0xc2   : > { %v567_v48 = vld [vmem:[%s1493_s1] sm:$0xf]  ;;  %v1134_v49 = vld [vmem:[%s1493_s1 + $0x8] sm:$0xf]  ;;  %v1145_v52 = vld [vmem:[%s1493_s1 + $0x10] sm:$0xf]  ;;  %618 = vmatpush.bf16.msra.mxu1 %v609_v22  ;;  %681 = vmatpush.bf16.msra.mxu3 %v672_v24 }
  0xc3   : > { %v576_v50 = vsel %vm571_vm2, %v567_v48, 0  ;;  %v640_v51 = vsel %vm571_vm2, %v1134_v49, 0  ;;  %v742_v53 = vsel %vm571_vm2, %v1145_v52, 0  ;;  %v1155_v41 = vld [vmem:[%s1493_s1 + $0x18] sm:$0xf]  ;;  %v897_v22 = vperm.slane %v1454_v1, 0 }
  0xc4   : > { %585 = vmatpush.bf16.xpose.msra.mxu0 %v576_v50  ;;  %649 = vmatpush.bf16.xpose.msra.mxu2 %v640_v51  ;;  %v826_v42 = vsel %vm571_vm2, %v1155_v41, 0  ;;  %v1153_v52 = vld [vmem:[%s1502_s3 + $0x18] sm:$0xf]  ;;  %p558_p0 = scmp.ge.s32.totalorder %s561_s8, 2  }
  0xc5   :  { %s909_s19 = sshll.u32 (%p558_p0), %s1577_s11, 4  ;;  %s1263_s20 = smov (%p558_p0), [#allocation5]   ;;  %s910_s19 = int_to_ptr.hbm [resolvable:$true] %s909_s19 }
  0xc6   : > { %722 = vmatpush.bf16.msrb.mxu3 %v713_v28  ;;  %703 = vmatpush.bf16.msrb.mxu1 %v694_v44  ;;  %s907_s21 = sshll.u32 (%p558_p0), %s1263_s20, 4  ;;  %s1264_s22 = smov (%p558_p0), 128   ;;  %s908_s21 = int_to_ptr.vmem [resolvable:$true] %s907_s21 }
  0xc7   :  { %s1265_s10 = smov (%p558_p0), 8  }
  0xcb   : > { %1129 = vmatmul.msk.bf16.vlgmr.msra.gmra.mxu0 %vm571_vm2, %v564_v54  ;;  %1137 = vmatmul.msk.bf16.vlgmr.msra.gmra.mxu2 %vm571_vm2, %v1132_v55 }
  0xcc   : > { %751 = vmatpush.bf16.xpose.msrb.mxu0 %v742_v53  ;;  %783 = vmatpush.bf16.msrb.mxu2 %v774_v26 }
  0xdb   : > { %1148 = vmatmul.msk.bf16.vlgmr.msrb.gmra.mxu0 %vm571_vm2, %v1143_v56 }
 0x148   : > { %v587_v57 = vpop.f32.mrf.mxu0 }
 0x149   : > { %v591_v58 = vmul.f32 0.35355338, %v587_v57 }
 0x14b   : > { %v592_v59 = vsel %vm571_vm2, %v591_v58, -inf }
 0x14c   : > { %593 = vmax.xlane.f32.xlu0 %v592_v59 }
 0x14e   : > { %v651_v60 = vpop.f32.mrf.mxu2 }
 0x14f   : > { %v655_v61 = vmul.f32 0.35355338, %v651_v60 }
 0x150   : > { %v589_v62 = vpop.f32.mrf.mxu0 }
 0x151   : > { %v656_v63 = vsel %vm571_vm2, %v655_v61, -inf }
 0x152   : > { %657 = vmax.xlane.f32.xlu1 %v656_v63 }
 0x156   : > { %v653_v0 = vpop.f32.mrf.mxu2 }
 0x158   : > { %v753_v2 = vpop.f32.mrf.mxu0 }
 0x159   : > { %v757_v3 = vmul.f32 0.35355338, %v753_v2 }
 0x15b   : > { %v758_v4 = vsel %vm571_vm2, %v757_v3, -inf }
 0x15c   : > { %759 = vmax.xlane.f32.xlu2 %v758_v4 }
 0x160   : > { %v755_v5 = vpop.f32.mrf.mxu0 }
 0x1bf   : > { %v594_v6 = vpop.xlane.xlu0 %593 }
 0x1c0   : > { %v595_v7 = vsub.f32 %v591_v58, %v594_v6  ;;  %v1157_v6 = vld [vmem:[%s1517_s4 + $0x18] sm:$0xf] }
 0x1c2   : > { %v596_v8 = vmul.f32 1.442695, %v595_v7  ;;  %v858_v7 = vsel %vm607_vm3, %v1157_v6, 0 }
 0x1c3   : > { %867 = vmatpush.bf16.msra.mxu0 %v858_v7 }
 0x1c4   : > { %1213 = vpow2.f32 %v596_v8 }
 0x1c5   : > { %v658_v9 = vpop.xlane.xlu1 %657 }
 0x1c6   : > { %v659_v10 = vsub.f32 %v655_v61, %v658_v9 }
 0x1c8   : > { %v660_v11 = vmul.f32 1.442695, %v659_v10 }
 0x1ca   : > { %v1214_v12 = vpop.eup %1213  ;;  %1215 = vpow2.f32 %v660_v11 }
 0x1cb   : > { %v598_v13 = vsel %vm571_vm2, %v1214_v12, 0.0 }
 0x1cc   : > { %599 = vadd.xlane.f32.xlu0 %v598_v13  ;;  %v1160_v13 = vld [vmem:[%s1572_s6 + $0xc] sm:$0xf] }
 0x1cf   : > { %v760_v14 = vpop.xlane.xlu2 %759 }
 0x1d0   : > { %v1216_v15 = vpop.eup %1215  ;;  %v761_v16 = vsub.f32 %v757_v3, %v760_v14  ;;  %v880_v14 = vsel %vm607_vm3, %v1160_v13, 0 }
 0x1d1   : > { %v662_v17 = vsel %vm571_vm2, %v1216_v15, 0.0  ;;  %889 = vmatpush.bf16.msra.mxu2 %v880_v14 }
 0x1d2   : > { %663 = vadd.xlane.f32.xlu1 %v662_v17  ;;  %v762_v18 = vmul.f32 1.442695, %v761_v16 }
 0x1d4   : > { %1217 = vpow2.f32 %v762_v18 }
 0x1da   : > { %v1218_v19 = vpop.eup %1217 }
 0x1db   : > { %v764_v20 = vsel %vm571_vm2, %v1218_v19, 0.0 }
 0x1dc   : > { %765 = vadd.xlane.f32.xlu0 %v764_v20 }
 0x23f   : > { %v600_v29 = vpop.xlane.xlu0 %599 }
 0x240   : > { %1219 = vrcp.f32 %v600_v29 }
 0x245   : > { %v664_v30 = vpop.xlane.xlu1 %663 }
 0x246   : > { %v1220_v31 = vpop.eup %1219  ;;  %1221 = vrcp.f32 %v664_v30 }
 0x247   : > { %v602_v32 = vmul.f32 %v1220_v31, %v1214_v12 }
 0x249   : > { %v603_v33 = vpack.c.bf16 %v602_v32, %v602_v32 }
 0x24b   : > { %1130 = vmatmul.msk.bf16.vlgmr.msra.gmra.mxu1 %vm571_vm2, %v603_v33 }
 0x24c   : > { %v1222_v34 = vpop.eup %1221  ;;  %805 = vmatpush.bf16.msra.mxu1 %v796_v46 }
 0x24d   : > { %v666_v35 = vmul.f32 %v1222_v34, %v1216_v15 }
 0x24f   : > { %v667_v36 = vpack.c.bf16 %v666_v35, %v666_v35  ;;  %v766_v37 = vpop.xlane.xlu0 %765 }
 0x250   : > { %1223 = vrcp.f32 %v766_v37 }
 0x251   : > { %1138 = vmatmul.msk.bf16.vlgmr.msra.gmra.mxu3 %vm571_vm2, %v667_v36 }
 0x252   : > { %835 = vmatpush.bf16.xpose.msra.mxu3 %v826_v42 }
 0x256   : > { %v1224_v38 = vpop.eup %1223 }
 0x257   : > { %v768_v39 = vmul.f32 %v1224_v38, %v1218_v19 }
 0x259   : > { %v769_v40 = vpack.c.bf16 %v768_v39, %v768_v39 }
 0x25b   : > { %1149 = vmatmul.msk.bf16.vlgmr.msrb.gmra.mxu2 %vm571_vm2, %v769_v40 }
 0x2c8   : > { %v620_v47 = vpop.f32.mrf.mxu1 }
 0x2c9   : > { %v624_v48 = vpack.c.bf16 %v620_v47, %v620_v47 }
 0x2cb   : > { %1141 = vmatmul.msk.bf16.vlgmr.msrb.gmra.mxu3 %vm571_vm2, %v624_v48 }
 0x2d0   : > { %v622_v49 = vpop.f32.mrf.mxu1 }
 0x2d4   : > { %v683_v50 = vpop.f32.mrf.mxu3 }
 0x2d5   : > { %v687_v51 = vpack.c.bf16 %v683_v50, %v683_v50 }
 0x2d7   : > { %1140 = vmatmul.msk.bf16.vlgmr.msrb.gmra.mxu1 %vm571_vm2, %v687_v51 }
 0x2db   : > { %1158 = vmatmul.msk.bf16.vlgmr.msra.gmra.mxu3 %vm571_vm2, %v1153_v52 }
 0x2dc   : > { %v685_v53 = vpop.f32.mrf.mxu3 }
 0x2de   : > { %v785_v54 = vpop.f32.mrf.mxu2 }
 0x2df   : > { %v789_v55 = vpack.c.bf16 %v785_v54, %v785_v54 }
 0x2e6   : > { %v787_v56 = vpop.f32.mrf.mxu2 }
 0x2e7   : > { %1151 = vmatmul.msk.bf16.vlgmr.msra.gmra.mxu1 %vm571_vm2, %v789_v55 }
 0x34e   : > { %v724_v57 = vpop.f32.mrf.mxu3 }
 0x354   : > { %v705_v58 = vpop.f32.mrf.mxu1 }
 0x355   : > { %v725_v59 = vadd.f32 %v724_v57, %v705_v58 }
 0x356   : > { %v726_v60 = vpop.f32.mrf.mxu3 }
 0x35c   : > { %v707_v61 = vpop.f32.mrf.mxu1 }
 0x35e   : > { %v837_v62 = vpop.f32.mrf.mxu3 }
 0x35f   : > { %v841_v63 = vmul.f32 0.35355338, %v837_v62 }
 0x361   : > { %v842_v0 = vsel %vm571_vm2, %v841_v63, -inf }
 0x362   : > { %843 = vmax.xlane.f32.xlu2 %v842_v0 }
 0x364   : > { %v807_v2 = vpop.f32.mrf.mxu1 }
 0x365   : > { %v811_v3 = vadd.f32 %v807_v2, %v725_v59 }
 0x366   : > { %v839_v4 = vpop.f32.mrf.mxu3 }
 0x36c   : > { %v809_v5 = vpop.f32.mrf.mxu1 }
 0x3d5   : > { %v844_v8 = vpop.xlane.xlu2 %843 }
 0x3d6   : > { %v845_v9 = vsub.f32 %v841_v63, %v844_v8 }
 0x3d8   : > { %v846_v10 = vmul.f32 1.442695, %v845_v9 }
 0x3da   : > { %1225 = vpow2.f32 %v846_v10 }
 0x3e0   : > { %v1226_v11 = vpop.eup %1225 }
 0x3e1   : > { %v848_v12 = vsel %vm571_vm2, %v1226_v11, 0.0 }
 0x3e2   : > { %849 = vadd.xlane.f32.xlu1 %v848_v12 }
 0x455   : > { %v850_v15 = vpop.xlane.xlu1 %849 }
 0x456   : > { %1227 = vrcp.f32 %v850_v15 }
 0x45c   : > { %v1228_v16 = vpop.eup %1227 }
 0x45d   : > { %v852_v17 = vmul.f32 %v1228_v16, %v1226_v11 }
 0x45f   : > { %v853_v18 = vpack.c.bf16 %v852_v17, %v852_v17 }
 0x461   : > { %1159 = vmatmul.msk.bf16.vlgmr.msra.gmra.mxu0 %vm571_vm2, %v853_v18 }
 0x4de   : > { %v869_v19 = vpop.f32.mrf.mxu0 }
 0x4df   : > { %v873_v20 = vpack.c.bf16 %v869_v19, %v869_v19 }
 0x4e1   : > { %1161 = vmatmul.msk.bf16.vlgmr.msra.gmra.mxu2 %vm571_vm2, %v873_v20 }
 0x4e6   : > { %v871_v21 = vpop.f32.mrf.mxu0 }
 0x564   : > { %v891_v23 = vpop.f32.mrf.mxu2 }
 0x565   : > { %v895_v24 = vadd.f32 %v891_v23, %v811_v3 }
 0x567   : > { %v899_v25 = vadd.f32 %v897_v22, %v895_v24 }
 0x568   :  { %560 = sbr.rel (!%p558_p0) target bundleno = 188 (0xbc), region = 114 }
 0x569   : > { %902 = vst.msk [vmem:[%s901_s16] sm:$0xff] %vm71_vm0, %v899_v25 }
 0x56a   :  { %915 = dma.vmem_to_hbm [thread:$0]  (%p558_p0), %s908_s21, 256, %s910_s19, [#allocation6], %s1264_s22, %s1264_s22, %s1265_s10  }
 0x56c   : > { %v893_v26 = vpop.f32.mrf.mxu2 }
 0x56d   :  { %1257 = dma.done.wait [#allocation6], 256  }
 0x56e   :  { %1258 = vsyncadd [#allocation6], 4294967040 }
 0x56f   :  { %920 = vsyncpa [#allocation6], 1 }

// kernel: tpu_custom_call.1
= control target key start
LH: loop header
LB: loop body
LE: loop exit
PB: predicated region body
PF: predicated region fallthrough
CT: control target
= control target key end

     0   :  { %16 = vsyncpa [#allocation6], 0  ;;  %vm71_vm0 = vcmask 261120   ;;  %vm175_vm1 = vcmask 60416   ;;  %s1566_s0 = inlined_call_operand.vmem [shape: bf16[16,32], index: 0, kind: input, shape index: {}]   ;;  %s1567_s1 = inlined_call_operand.vmem [shape: bf16[16,32], index: 1, kind: input, shape index: {}]   ;;  %s1568_s2 = inlined_call_operand.vmem [shape: bf16[16,32], index: 2, kind: input, shape index: {}]   ;;  %s1569_s3 = inlined_call_operand.vmem [shape: bf16[4,32,8], index: 3, kind: input, shape index: {}]   ;;  %s1570_s4 = inlined_call_operand.vmem [shape: bf16[4,32,8], index: 4, kind: input, shape index: {}]   ;;  %s1571_s5 = inlined_call_operand.vmem [shape: bf16[4,32,8], index: 5, kind: input, shape index: {}]   ;;  %s1572_s6 = inlined_call_operand.vmem [shape: bf16[4,8,32], index: 6, kind: input, shape index: {}]   ;;  %s1573_s7 = inlined_call_operand.vmem [shape: f32[4,1,8], index: 7, kind: input, shape index: {}]   ;;  %s1574_s8 = inlined_call_operand.vmem [shape: f32[4,1,8], index: 8, kind: input, shape index: {}]   ;;  %s1575_s9 = inlined_call_operand.vmem [shape: f32[4,1,8], index: 9, kind: input, shape index: {}]   ;;  %s1576_s10 = inlined_call_operand.vmem [shape: f32[1,32], index: 10, kind: input, shape index: {}]   ;;  %s1577_s11 = inlined_call_operand.hbm [shape: f32[16,32], index: 11, kind: output, shape index: {}]  }
   0x1   :  { %v1167_v0 = vld [vmem:[%s1569_s3 + $0x8] sm:$0xff]  ;;  %v1173_v3 = vld [vmem:[%s1569_s3 + $0x18] sm:$0xff]  ;;  %v1166_v4 = vld [vmem:[%s1569_s3] sm:$0xff] }
   0x2   :  { %v1169_v1 = vld [vmem:[%s1570_s4 + $0x8] sm:$0xff]  ;;  %81 = vmatpush.bf16.msra.mxu0 %v1167_v0  ;;  %v1168_v5 = vld [vmem:[%s1570_s4] sm:$0xff]  ;;  %214 = vmatpush.bf16.msra.mxu3 %v1173_v3  ;;  %v1172_v7 = vld [vmem:[%s1569_s3 + $0x10] sm:$0xff] }
   0x3   :  { %v1171_v2 = vld [vmem:[%s1571_s5 + $0x8] sm:$0xff]  ;;  %123 = vmatpush.bf16.msra.mxu1 %v1169_v1  ;;  %v1170_v6 = vld [vmem:[%s1571_s5] sm:$0xff]  ;;  %v1175_v13 = vld [vmem:[%s1570_s4 + $0x18] sm:$0xff] }
   0x4   :  { %165 = vmatpush.bf16.msra.mxu2 %v1171_v2  ;;  %v1179_v8 = vld [vmem:[%s1569_s3 + $0x28] sm:$0xff]  ;;  %v1163_v10 = vld [vmem:[%s1566_s0] sm:$0xff]  ;;  %v1177_v14 = vld [vmem:[%s1571_s5 + $0x18] sm:$0xff] }
   0x5   :  { %v1181_v9 = vld [vmem:[%s1570_s4 + $0x28] sm:$0xff]  ;;  %v1164_v11 = vld [vmem:[%s1567_s1] sm:$0xff]  ;;  %v1187_v17 = vld [vmem:[%s1570_s4 + $0x38] sm:$0xff] }
   0x6   :  { %82 = vmatpush.bf16.msra.mxu0 %v1166_v4  ;;  %v1165_v12 = vld [vmem:[%s1568_s2] sm:$0xff]  ;;  %215 = vmatpush.bf16.msra.mxu3 %v1172_v7  ;;  %v1174_v18 = vld [vmem:[%s1570_s4 + $0x10] sm:$0xff]  ;;  %v1189_v20 = vld [vmem:[%s1571_s5 + $0x38] sm:$0xff] }
   0x7   :  { %124 = vmatpush.bf16.msra.mxu1 %v1168_v5  ;;  %v1178_v15 = vld [vmem:[%s1569_s3 + $0x20] sm:$0xff]  ;;  %v1176_v19 = vld [vmem:[%s1571_s5 + $0x10] sm:$0xff]  ;;  %v1183_v21 = vld [vmem:[%s1571_s5 + $0x28] sm:$0xff] }
   0x8   :  { %166 = vmatpush.bf16.msra.mxu2 %v1170_v6  ;;  %v1180_v16 = vld [vmem:[%s1570_s4 + $0x20] sm:$0xff]  ;;  %v1185_v22 = vld [vmem:[%s1569_s3 + $0x38] sm:$0xff]  ;;  %v1186_v23 = vld [vmem:[%s1570_s4 + $0x30] sm:$0xff] }
   0x9   :  { %973 = vmatmul.msk.bf16.vlgmr.msra.gmra.mxu0 %vm71_vm0, %v1163_v10  ;;  %1013 = vmatmul.msk.bf16.vlgmr.msra.gmra.mxu3 %vm71_vm0, %v1163_v10  ;;  %v1188_v24 = vld [vmem:[%s1571_s5 + $0x30] sm:$0xff]  ;;  %v1182_v25 = vld [vmem:[%s1571_s5 + $0x20] sm:$0xff] }
   0xa   :  { %373 = vmatpush.bf16.msrb.mxu3 %v1181_v9  ;;  %986 = vmatmul.msk.bf16.vlgmr.msra.gmra.mxu1 %vm71_vm0, %v1164_v11  ;;  %v1184_v26 = vld [vmem:[%s1569_s3 + $0x30] sm:$0xff]  ;;  %v1201_v27 = vld [vmem:[%s1573_s7] ss:$0 sm:$0xff]  ;;  %v1204_v36 = vld [vmem:[%s1573_s7 + $0x1] ss:$0 sm:$0xff] }
   0xb   :  { %999 = vmatmul.msk.bf16.vlgmr.msra.gmra.mxu2 %vm71_vm0, %v1165_v12  ;;  %250 = vmatpush.bf16.msrb.mxu0 %v1175_v13  ;;  %v1202_v28 = vld [vmem:[%s1574_s8] ss:$0 sm:$0xff]  ;;  %v1205_v49 = vld [vmem:[%s1574_s8 + $0x1] ss:$0 sm:$0xff]  ;;  %v1207_v63 = vld [vmem:[%s1573_s7 + $0x2] ss:$0 sm:$0xff] }
   0xc   :  { %337 = vmatpush.bf16.msrb.mxu2 %v1179_v8  ;;  %286 = vmatpush.bf16.msrb.mxu1 %v1177_v14  ;;  %v1203_v35 = vld [vmem:[%s1575_s9] ss:$0 sm:$0xff]  ;;  %v1206_v50 = vld [vmem:[%s1575_s9 + $0x1] ss:$0 sm:$0xff]  ;;  %v1208_v0 = vld [vmem:[%s1574_s8 + $0x2] ss:$0 sm:$0xff] }
   0xd   :  { %v1454_v1 = vld [vmem:[%s1576_s10] sm:$0x1]  ;;  %v1209_v14 = vld [vmem:[%s1575_s9 + $0x2] ss:$0 sm:$0xff] }
   0xe   :  { %374 = vmatpush.bf16.msrb.mxu3 %v1180_v16 }
   0xf   :  { %251 = vmatpush.bf16.msrb.mxu0 %v1174_v18 }
  0x10   :  { %338 = vmatpush.bf16.msrb.mxu2 %v1178_v15  ;;  %287 = vmatpush.bf16.msrb.mxu1 %v1176_v19  ;;  %v1210_v15 = vld [vmem:[%s1573_s7 + $0x3] ss:$0 sm:$0xff] }
  0x12   :  { %532 = vmatpush.bf16.msra.mxu3 %v1189_v20 }
  0x13   :  { %409 = vmatpush.bf16.msra.mxu0 %v1183_v21 }
  0x14   :  { %496 = vmatpush.bf16.msra.mxu2 %v1187_v17  ;;  %460 = vmatpush.bf16.msra.mxu1 %v1185_v22 }
  0x16   :  { %533 = vmatpush.bf16.msra.mxu3 %v1188_v24 }
  0x17   :  { %410 = vmatpush.bf16.msra.mxu0 %v1182_v25 }
  0x18   :  { %497 = vmatpush.bf16.msra.mxu2 %v1186_v23  ;;  %461 = vmatpush.bf16.msra.mxu1 %v1184_v26 }
  0x19   :  { %1027 = vmatmul.msk.bf16.vlgmr.msrb.gmra.mxu0 %vm71_vm0, %v1164_v11  ;;  %1069 = vmatmul.msk.bf16.vlgmr.msrb.gmra.mxu3 %vm71_vm0, %v1164_v11 }
  0x1a   :  { %1041 = vmatmul.msk.bf16.vlgmr.msrb.gmra.mxu1 %vm71_vm0, %v1165_v12 }
  0x1b   :  { %1055 = vmatmul.msk.bf16.vlgmr.msrb.gmra.mxu2 %vm71_vm0, %v1163_v10 }
  0x29   :  { %1083 = vmatmul.msk.bf16.vlgmr.msra.gmra.mxu0 %vm71_vm0, %v1165_v12  ;;  %1125 = vmatmul.msk.bf16.vlgmr.msra.gmra.mxu3 %vm71_vm0, %v1165_v12 }
  0x2a   :  { %1097 = vmatmul.msk.bf16.vlgmr.msra.gmra.mxu1 %vm71_vm0, %v1163_v10 }
  0x2b   :  { %1111 = vmatmul.msk.bf16.vlgmr.msra.gmra.mxu2 %vm71_vm0, %v1164_v11 }
  0x86   :  { %v84_v29 = vpop.f32.mrf.mxu0 }
  0x87   :  { %v126_v30 = vpop.f32.mrf.mxu1  ;;  %v85_v31 = vadd.f32 %v1201_v27, %v84_v29  ;;  %v1212_v29 = vld [vmem:[%s1575_s9 + $0x3] ss:$0 sm:$0xff] }
  0x88   :  { %v127_v32 = vadd.f32 %v1202_v28, %v126_v30 }
  0x89   :  { %v173_v33 = vpack.c.bf16 %v85_v31, %v85_v31 }
  0x8a   :  { %v178_v34 = vpack.c.bf16 %v127_v32, %v127_v32 }
  0x8b   :  { %176 = vst.msk [vmem:[#allocation2] sm:$0xf] %vm175_vm1, %v173_v33 }
  0x8c   :  { %180 = vst.msk [vmem:[#allocation3] sm:$0xf] %vm175_vm1, %v178_v34  ;;  %v217_v38 = vpop.f32.mrf.mxu3 }
  0x8d   :  { %v218_v40 = vadd.f32 %v1204_v36, %v217_v38 }
  0x8e   :  { %v168_v37 = vpop.f32.mrf.mxu2  ;;  %v86_v41 = vpop.f32.mrf.mxu0 }
  0x8f   :  { %v169_v39 = vadd.f32 %v1203_v35, %v168_v37  ;;  %v128_v42 = vpop.f32.mrf.mxu1  ;;  %v87_v43 = vadd.f32 %v1201_v27, %v86_v41  ;;  %v294_v46 = vpack.c.bf16 %v218_v40, %v218_v40 }
  0x90   :  { %v129_v44 = vadd.f32 %v1202_v28, %v128_v42  ;;  %v1211_v28 = vld [vmem:[%s1574_s8 + $0x3] ss:$0 sm:$0xff]  ;;  %s1484_s8 = smov 0  }
  0x91   :  { %v182_v45 = vpack.c.bf16 %v169_v39, %v169_v39  ;;  %v174_v47 = vpack.c.bf16 %v87_v43, %v87_v43  ;;  %297 = vst.msk [vmem:[#allocation2 + $0x8] sm:$0xf] %vm175_vm1, %v294_v46 }
  0x92   :  { %v179_v48 = vpack.c.bf16 %v129_v44, %v129_v44 }
  0x93   :  { %184 = vst.msk [vmem:[#allocation4] sm:$0xf] %vm175_vm1, %v182_v45 }
  0x94   :  { %177 = vst.msk [vmem:[#allocation2 + $0x4] sm:$0xf] %vm175_vm1, %v174_v47  ;;  %v219_v52 = vpop.f32.mrf.mxu3 }
  0x95   :  { %181 = vst.msk [vmem:[#allocation3 + $0x4] sm:$0xf] %vm175_vm1, %v179_v48  ;;  %v220_v54 = vadd.f32 %v1204_v36, %v219_v52 }
  0x96   :  { %v170_v51 = vpop.f32.mrf.mxu2  ;;  %v253_v55 = vpop.f32.mrf.mxu0 }
  0x97   :  { %v171_v53 = vadd.f32 %v1203_v35, %v170_v51  ;;  %v289_v56 = vpop.f32.mrf.mxu1  ;;  %v254_v57 = vadd.f32 %v1205_v49, %v253_v55  ;;  %v295_v60 = vpack.c.bf16 %v220_v54, %v220_v54 }
  0x98   :  { %v290_v58 = vadd.f32 %v1206_v50, %v289_v56 }
  0x99   :  { %v183_v59 = vpack.c.bf16 %v171_v53, %v171_v53  ;;  %v299_v61 = vpack.c.bf16 %v254_v57, %v254_v57  ;;  %298 = vst.msk [vmem:[#allocation2 + $0xc] sm:$0xf] %vm175_vm1, %v295_v60 }
  0x9a   :  { %v304_v62 = vpack.c.bf16 %v290_v58, %v290_v58 }
  0x9b   :  { %185 = vst.msk [vmem:[#allocation4 + $0x4] sm:$0xf] %vm175_vm1, %v183_v59 }
  0x9c   :  { %302 = vst.msk [vmem:[#allocation3 + $0x8] sm:$0xf] %vm175_vm1, %v299_v61  ;;  %v376_v3 = vpop.f32.mrf.mxu3 }
  0x9d   :  { %307 = vst.msk [vmem:[#allocation4 + $0x8] sm:$0xf] %vm175_vm1, %v304_v62  ;;  %v377_v5 = vadd.f32 %v1208_v0, %v376_v3 }
  0x9e   :  { %v340_v2 = vpop.f32.mrf.mxu2  ;;  %v255_v6 = vpop.f32.mrf.mxu0 }
  0x9f   :  { %v341_v4 = vadd.f32 %v1207_v63, %v340_v2  ;;  %v291_v7 = vpop.f32.mrf.mxu1  ;;  %v256_v8 = vadd.f32 %v1205_v49, %v255_v6  ;;  %v422_v11 = vpack.c.bf16 %v377_v5, %v377_v5 }
  0xa0   :  { %v292_v9 = vadd.f32 %v1206_v50, %v291_v7 }
  0xa1   :  { %v417_v10 = vpack.c.bf16 %v341_v4, %v341_v4  ;;  %v300_v12 = vpack.c.bf16 %v256_v8, %v256_v8  ;;  %425 = vst.msk [vmem:[#allocation3 + $0x10] sm:$0xf] %vm175_vm1, %v422_v11 }
  0xa2   :  { %v305_v13 = vpack.c.bf16 %v292_v9, %v292_v9 }
  0xa3   :  { %420 = vst.msk [vmem:[#allocation2 + $0x10] sm:$0xf] %vm175_vm1, %v417_v10 }
  0xa4   :  { %303 = vst.msk [vmem:[#allocation3 + $0xc] sm:$0xf] %vm175_vm1, %v300_v12  ;;  %v378_v17 = vpop.f32.mrf.mxu3 }
  0xa5   :  { %308 = vst.msk [vmem:[#allocation4 + $0xc] sm:$0xf] %vm175_vm1, %v305_v13  ;;  %v379_v19 = vadd.f32 %v1208_v0, %v378_v17 }
  0xa6   :  { %v342_v16 = vpop.f32.mrf.mxu2  ;;  %v412_v20 = vpop.f32.mrf.mxu0 }
  0xa7   :  { %v343_v18 = vadd.f32 %v1207_v63, %v342_v16  ;;  %v463_v21 = vpop.f32.mrf.mxu1  ;;  %v413_v22 = vadd.f32 %v1209_v14, %v412_v20  ;;  %v423_v25 = vpack.c.bf16 %v379_v19, %v379_v19 }
  0xa8   :  { %v464_v23 = vadd.f32 %v1210_v15, %v463_v21 }
  0xa9   :  { %v418_v24 = vpack.c.bf16 %v343_v18, %v343_v18  ;;  %v427_v26 = vpack.c.bf16 %v413_v22, %v413_v22  ;;  %426 = vst.msk [vmem:[#allocation3 + $0x14] sm:$0xf] %vm175_vm1, %v423_v25 }
  0xaa   :  { %v540_v27 = vpack.c.bf16 %v464_v23, %v464_v23 }
  0xab   :  { %421 = vst.msk [vmem:[#allocation2 + $0x14] sm:$0xf] %vm175_vm1, %v418_v24 }
  0xac   :  { %430 = vst.msk [vmem:[#allocation4 + $0x10] sm:$0xf] %vm175_vm1, %v427_v26  ;;  %v535_v31 = vpop.f32.mrf.mxu3 }
  0xad   :  { %543 = vst.msk [vmem:[#allocation2 + $0x18] sm:$0xf] %vm175_vm1, %v540_v27  ;;  %v536_v33 = vadd.f32 %v1212_v29, %v535_v31 }
  0xae   :  { %v499_v30 = vpop.f32.mrf.mxu2  ;;  %v414_v34 = vpop.f32.mrf.mxu0 }
  0xaf   :  { %v500_v32 = vadd.f32 %v1211_v28, %v499_v30  ;;  %v465_v35 = vpop.f32.mrf.mxu1  ;;  %v415_v36 = vadd.f32 %v1209_v14, %v414_v34  ;;  %v550_v39 = vpack.c.bf16 %v536_v33, %v536_v33 }
  0xb0   :  { %v466_v37 = vadd.f32 %v1210_v15, %v465_v35 }
  0xb1   :  { %v545_v38 = vpack.c.bf16 %v500_v32, %v500_v32  ;;  %v428_v40 = vpack.c.bf16 %v415_v36, %v415_v36  ;;  %553 = vst.msk [vmem:[#allocation4 + $0x18] sm:$0xf] %vm175_vm1, %v550_v39 }
  0xb2   :  { %v541_v41 = vpack.c.bf16 %v466_v37, %v466_v37 }
  0xb3   :  { %548 = vst.msk [vmem:[#allocation3 + $0x18] sm:$0xf] %vm175_vm1, %v545_v38 }
  0xb4   :  { %431 = vst.msk [vmem:[#allocation4 + $0x14] sm:$0xf] %vm175_vm1, %v428_v40  ;;  %v537_v43 = vpop.f32.mrf.mxu3 }
  0xb5   :  { %544 = vst.msk [vmem:[#allocation2 + $0x1c] sm:$0xf] %vm175_vm1, %v541_v41  ;;  %v538_v45 = vadd.f32 %v1212_v29, %v537_v43 }
  0xb6   :  { %v501_v42 = vpop.f32.mrf.mxu2 }
  0xb7   :  { %v502_v44 = vadd.f32 %v1211_v28, %v501_v42  ;;  %v551_v47 = vpack.c.bf16 %v538_v45, %v538_v45 }
  0xb9   :  { %v546_v46 = vpack.c.bf16 %v502_v44, %v502_v44  ;;  %554 = vst.msk [vmem:[#allocation4 + $0x1c] sm:$0xf] %vm175_vm1, %v551_v47 }
  0xbb   :  { %549 = vst.msk [vmem:[#allocation3 + $0x1c] sm:$0xf] %vm175_vm1, %v546_v46 }
  0xbc LB: > { %s1490_s9 = sshll.u32 %s1261_s8, 2  ;;  %vm571_vm2 = vcmask 64512   ;;  %vm607_vm3 = vcmask 1043456   ;;  %v625_v27 = vld [vmem:[%s1572_s6] sm:$0xf]  ;;  %s1162_s15 = sshll.u32 %s1261_s8, 3  ;;  %s1261_s8 = sphi %s1484_s8, %s561_s8  }
  0xbd   : > { %s1493_s1 = scalar_lea.vmem [#allocation3], %s1490_s9  ;;  %s1502_s3 = scalar_lea.vmem [#allocation2], %s1490_s9  ;;  %v713_v28 = vsel %vm607_vm3, %v625_v27, 0  ;;  %v1139_v43 = vld [vmem:[%s1572_s6 + $0x4] sm:$0xf] }
  0xbe   : > { %v564_v54 = vld [vmem:[%s1502_s3] sm:$0xf]  ;;  %v1132_v55 = vld [vmem:[%s1502_s3 + $0x8] sm:$0xf]  ;;  %v1143_v56 = vld [vmem:[%s1502_s3 + $0x10] sm:$0xf] }
  0xbf   : > { %s1517_s4 = scalar_lea.vmem [#allocation4], %s1490_s9  ;;  %v694_v44 = vsel %vm607_vm3, %v1139_v43, 0  ;;  %v1150_v45 = vld [vmem:[%s1572_s6 + $0x8] sm:$0xf]  ;;  %s901_s16 = scalar_lea.vmem [#allocation5], %s1162_s15 }
  0xc0   : > { %v570_v21 = vld [vmem:[%s1517_s4] sm:$0xf]  ;;  %v1136_v23 = vld [vmem:[%s1517_s4 + $0x8] sm:$0xf]  ;;  %v1147_v25 = vld [vmem:[%s1517_s4 + $0x10] sm:$0xf] }
  0xc1   : > { %v609_v22 = vsel %vm607_vm3, %v570_v21, 0  ;;  %v672_v24 = vsel %vm607_vm3, %v1136_v23, 0  ;;  %v774_v26 = vsel %vm607_vm3, %v1147_v25, 0  ;;  %v796_v46 = vsel %vm607_vm3, %v1150_v45, 0  ;;  %s561_s8 = sadd.s32 1, %s1261_s8  }
  0xc2   : > { %v567_v48 = vld [vmem:[%s1493_s1] sm:$0xf]  ;;  %v1134_v49 = vld [vmem:[%s1493_s1 + $0x8] sm:$0xf]  ;;  %v1145_v52 = vld [vmem:[%s1493_s1 + $0x10] sm:$0xf]  ;;  %618 = vmatpush.bf16.msra.mxu1 %v609_v22  ;;  %681 = vmatpush.bf16.msra.mxu3 %v672_v24 }
  0xc3   : > { %v576_v50 = vsel %vm571_vm2, %v567_v48, 0  ;;  %v640_v51 = vsel %vm571_vm2, %v1134_v49, 0  ;;  %v742_v53 = vsel %vm571_vm2, %v1145_v52, 0  ;;  %v1155_v41 = vld [vmem:[%s1493_s1 + $0x18] sm:$0xf]  ;;  %v897_v22 = vperm.slane %v1454_v1, 0 }
  0xc4   : > { %585 = vmatpush.bf16.xpose.msra.mxu0 %v576_v50  ;;  %649 = vmatpush.bf16.xpose.msra.mxu2 %v640_v51  ;;  %v826_v42 = vsel %vm571_vm2, %v1155_v41, 0  ;;  %v1153_v52 = vld [vmem:[%s1502_s3 + $0x18] sm:$0xf]  ;;  %p558_p0 = scmp.ge.s32.totalorder %s561_s8, 2  }
  0xc5   :  { %s909_s19 = sshll.u32 (%p558_p0), %s1577_s11, 4  ;;  %s1263_s20 = smov (%p558_p0), [#allocation5]   ;;  %s910_s19 = int_to_ptr.hbm [resolvable:$true] %s909_s19 }
  0xc6   : > { %722 = vmatpush.bf16.msrb.mxu3 %v713_v28  ;;  %703 = vmatpush.bf16.msrb.mxu1 %v694_v44  ;;  %s907_s21 = sshll.u32 (%p558_p0), %s1263_s20, 4  ;;  %s1264_s22 = smov (%p558_p0), 128   ;;  %s908_s21 = int_to_ptr.vmem [resolvable:$true] %s907_s21 }
  0xc7   :  { %s1265_s10 = smov (%p558_p0), 8  }
  0xcb   : > { %1129 = vmatmul.msk.bf16.vlgmr.msra.gmra.mxu0 %vm571_vm2, %v564_v54  ;;  %1137 = vmatmul.msk.bf16.vlgmr.msra.gmra.mxu2 %vm571_vm2, %v1132_v55 }
  0xcc   : > { %751 = vmatpush.bf16.xpose.msrb.mxu0 %v742_v53  ;;  %783 = vmatpush.bf16.msrb.mxu2 %v774_v26 }
  0xdb   : > { %1148 = vmatmul.msk.bf16.vlgmr.msrb.gmra.mxu0 %vm571_vm2, %v1143_v56 }
 0x148   : > { %v587_v57 = vpop.f32.mrf.mxu0 }
 0x149   : > { %v591_v58 = vmul.f32 0.35355338, %v587_v57 }
 0x14b   : > { %v592_v59 = vsel %vm571_vm2, %v591_v58, -inf }
 0x14c   : > { %593 = vmax.xlane.f32.xlu0 %v592_v59 }
 0x14e   : > { %v651_v60 = vpop.f32.mrf.mxu2 }
 0x14f   : > { %v655_v61 = vmul.f32 0.35355338, %v651_v60 }
 0x150   : > { %v589_v62 = vpop.f32.mrf.mxu0 }
 0x151   : > { %v656_v63 = vsel %vm571_vm2, %v655_v61, -inf }
 0x152   : > { %657 = vmax.xlane.f32.xlu1 %v656_v63 }
 0x156   : > { %v653_v0 = vpop.f32.mrf.mxu2 }
 0x158   : > { %v753_v2 = vpop.f32.mrf.mxu0 }
 0x159   : > { %v757_v3 = vmul.f32 0.35355338, %v753_v2 }
 0x15b   : > { %v758_v4 = vsel %vm571_vm2, %v757_v3, -inf }
 0x15c   : > { %759 = vmax.xlane.f32.xlu2 %v758_v4 }
 0x160   : > { %v755_v5 = vpop.f32.mrf.mxu0 }
 0x1bf   : > { %v594_v6 = vpop.xlane.xlu0 %593 }
 0x1c0   : > { %v595_v7 = vsub.f32 %v591_v58, %v594_v6  ;;  %v1157_v6 = vld [vmem:[%s1517_s4 + $0x18] sm:$0xf] }
 0x1c2   : > { %v596_v8 = vmul.f32 1.442695, %v595_v7  ;;  %v858_v7 = vsel %vm607_vm3, %v1157_v6, 0 }
 0x1c3   : > { %867 = vmatpush.bf16.msra.mxu0 %v858_v7 }
 0x1c4   : > { %1213 = vpow2.f32 %v596_v8 }
 0x1c5   : > { %v658_v9 = vpop.xlane.xlu1 %657 }
 0x1c6   : > { %v659_v10 = vsub.f32 %v655_v61, %v658_v9 }
 0x1c8   : > { %v660_v11 = vmul.f32 1.442695, %v659_v10 }
 0x1ca   : > { %v1214_v12 = vpop.eup %1213  ;;  %1215 = vpow2.f32 %v660_v11 }
 0x1cb   : > { %v598_v13 = vsel %vm571_vm2, %v1214_v12, 0.0 }
 0x1cc   : > { %599 = vadd.xlane.f32.xlu0 %v598_v13  ;;  %v1160_v13 = vld [vmem:[%s1572_s6 + $0xc] sm:$0xf] }
 0x1cf   : > { %v760_v14 = vpop.xlane.xlu2 %759 }
 0x1d0   : > { %v1216_v15 = vpop.eup %1215  ;;  %v761_v16 = vsub.f32 %v757_v3, %v760_v14  ;;  %v880_v14 = vsel %vm607_vm3, %v1160_v13, 0 }
 0x1d1   : > { %v662_v17 = vsel %vm571_vm2, %v1216_v15, 0.0  ;;  %889 = vmatpush.bf16.msra.mxu2 %v880_v14 }
 0x1d2   : > { %663 = vadd.xlane.f32.xlu1 %v662_v17  ;;  %v762_v18 = vmul.f32 1.442695, %v761_v16 }
 0x1d4   : > { %1217 = vpow2.f32 %v762_v18 }
 0x1da   : > { %v1218_v19 = vpop.eup %1217 }
 0x1db   : > { %v764_v20 = vsel %vm571_vm2, %v1218_v19, 0.0 }
 0x1dc   : > { %765 = vadd.xlane.f32.xlu0 %v764_v20 }
 0x23f   : > { %v600_v29 = vpop.xlane.xlu0 %599 }
 0x240   : > { %1219 = vrcp.f32 %v600_v29 }
 0x245   : > { %v664_v30 = vpop.xlane.xlu1 %663 }
 0x246   : > { %v1220_v31 = vpop.eup %1219  ;;  %1221 = vrcp.f32 %v664_v30 }
 0x247   : > { %v602_v32 = vmul.f32 %v1220_v31, %v1214_v12 }
 0x249   : > { %v603_v33 = vpack.c.bf16 %v602_v32, %v602_v32 }
 0x24b   : > { %1130 = vmatmul.msk.bf16.vlgmr.msra.gmra.mxu1 %vm571_vm2, %v603_v33 }
 0x24c   : > { %v1222_v34 = vpop.eup %1221  ;;  %805 = vmatpush.bf16.msra.mxu1 %v796_v46 }
 0x24d   : > { %v666_v35 = vmul.f32 %v1222_v34, %v1216_v15 }
 0x24f   : > { %v667_v36 = vpack.c.bf16 %v666_v35, %v666_v35  ;;  %v766_v37 = vpop.xlane.xlu0 %765 }
 0x250   : > { %1223 = vrcp.f32 %v766_v37 }
 0x251   : > { %1138 = vmatmul.msk.bf16.vlgmr.msra.gmra.mxu3 %vm571_vm2, %v667_v36 }
 0x252   : > { %835 = vmatpush.bf16.xpose.msra.mxu3 %v826_v42 }
 0x256   : > { %v1224_v38 = vpop.eup %1223 }
 0x257   : > { %v768_v39 = vmul.f32 %v1224_v38, %v1218_v19 }
 0x259   : > { %v769_v40 = vpack.c.bf16 %v768_v39, %v768_v39 }
 0x25b   : > { %1149 = vmatmul.msk.bf16.vlgmr.msrb.gmra.mxu2 %vm571_vm2, %v769_v40 }
 0x2c8   : > { %v620_v47 = vpop.f32.mrf.mxu1 }
 0x2c9   : > { %v624_v48 = vpack.c.bf16 %v620_v47, %v620_v47 }
 0x2cb   : > { %1141 = vmatmul.msk.bf16.vlgmr.msrb.gmra.mxu3 %vm571_vm2, %v624_v48 }
 0x2d0   : > { %v622_v49 = vpop.f32.mrf.mxu1 }
 0x2d4   : > { %v683_v50 = vpop.f32.mrf.mxu3 }
 0x2d5   : > { %v687_v51 = vpack.c.bf16 %v683_v50, %v683_v50 }
 0x2d7   : > { %1140 = vmatmul.msk.bf16.vlgmr.msrb.gmra.mxu1 %vm571_vm2, %v687_v51 }
 0x2db   : > { %1158 = vmatmul.msk.bf16.vlgmr.msra.gmra.mxu3 %vm571_vm2, %v1153_v52 }
 0x2dc   : > { %v685_v53 = vpop.f32.mrf.mxu3 }
 0x2de   : > { %v785_v54 = vpop.f32.mrf.mxu2 }
 0x2df   : > { %v789_v55 = vpack.c.bf16 %v785_v54, %v785_v54 }
 0x2e6   : > { %v787_v56 = vpop.f32.mrf.mxu2 }
 0x2e7   : > { %1151 = vmatmul.msk.bf16.vlgmr.msra.gmra.mxu1 %vm571_vm2, %v789_v55 }
 0x34e   : > { %v724_v57 = vpop.f32.mrf.mxu3 }
 0x354   : > { %v705_v58 = vpop.f32.mrf.mxu1 }
 0x355   : > { %v725_v59 = vadd.f32 %v724_v57, %v705_v58 }
 0x356   : > { %v726_v60 = vpop.f32.mrf.mxu3 }
 0x35c   : > { %v707_v61 = vpop.f32.mrf.mxu1 }
 0x35e   : > { %v837_v62 = vpop.f32.mrf.mxu3 }
 0x35f   : > { %v841_v63 = vmul.f32 0.35355338, %v837_v62 }
 0x361   : > { %v842_v0 = vsel %vm571_vm2, %v841_v63, -inf }
 0x362   : > { %843 = vmax.xlane.f32.xlu2 %v842_v0 }
 0x364   : > { %v807_v2 = vpop.f32.mrf.mxu1 }
 0x365   : > { %v811_v3 = vadd.f32 %v807_v2, %v725_v59 }
 0x366   : > { %v839_v4 = vpop.f32.mrf.mxu3 }
 0x36c   : > { %v809_v5 = vpop.f32.mrf.mxu1 }
 0x3d5   : > { %v844_v8 = vpop.xlane.xlu2 %843 }
 0x3d6   : > { %v845_v9 = vsub.f32 %v841_v63, %v844_v8 }
 0x3d8   : > { %v846_v10 = vmul.f32 1.442695, %v845_v9 }
 0x3da   : > { %1225 = vpow2.f32 %v846_v10 }
 0x3e0   : > { %v1226_v11 = vpop.eup %1225 }
 0x3e1   : > { %v848_v12 = vsel %vm571_vm2, %v1226_v11, 0.0 }
 0x3e2   : > { %849 = vadd.xlane.f32.xlu1 %v848_v12 }
 0x455   : > { %v850_v15 = vpop.xlane.xlu1 %849 }
 0x456   : > { %1227 = vrcp.f32 %v850_v15 }
 0x45c   : > { %v1228_v16 = vpop.eup %1227 }
 0x45d   : > { %v852_v17 = vmul.f32 %v1228_v16, %v1226_v11 }
 0x45f   : > { %v853_v18 = vpack.c.bf16 %v852_v17, %v852_v17 }
 0x461   : > { %1159 = vmatmul.msk.bf16.vlgmr.msra.gmra.mxu0 %vm571_vm2, %v853_v18 }
 0x4de   : > { %v869_v19 = vpop.f32.mrf.mxu0 }
 0x4df   : > { %v873_v20 = vpack.c.bf16 %v869_v19, %v869_v19 }
 0x4e1   : > { %1161 = vmatmul.msk.bf16.vlgmr.msra.gmra.mxu2 %vm571_vm2, %v873_v20 }
 0x4e6   : > { %v871_v21 = vpop.f32.mrf.mxu0 }
 0x564   : > { %v891_v23 = vpop.f32.mrf.mxu2 }
 0x565   : > { %v895_v24 = vadd.f32 %v891_v23, %v811_v3 }
 0x567   : > { %v899_v25 = vadd.f32 %v897_v22, %v895_v24 }
 0x568   :  { %560 = sbr.rel (!%p558_p0) target bundleno = 188 (0xbc), region = 114 }
 0x569   : > { %902 = vst.msk [vmem:[%s901_s16] sm:$0xff] %vm71_vm0, %v899_v25 }
 0x56a   :  { %915 = dma.vmem_to_hbm [thread:$0]  (%p558_p0), %s908_s21, 256, %s910_s19, [#allocation6], %s1264_s22, %s1264_s22, %s1265_s10  }
 0x56c   : > { %v893_v26 = vpop.f32.mrf.mxu2 }
 0x56d   :  { %1257 = dma.done.wait [#allocation6], 256  }
 0x56e   :  { %1258 = vsyncadd [#allocation6], 4294967040 }
 0x56f   :  { %920 = vsyncpa [#allocation6], 1 }

</bundles_post_ra>
